<compile_context>
chip_gen: v5e
topology: v5e:2x2
jax: 0.10.0
libtpu: 0.0.40
codegen_flags: <defaults>
</compile_context>

<pallas_src>
import jax
import jax.numpy as jnp
from jax.experimental import pallas as pl
from jax.experimental.pallas import tpu as pltpu

HIDDEN = 768
NUM_CLASSES = 2
NUM_CLASSES_PAD = 128  # lane-dense classifier / output width


def _round_up(x, m):
    return ((x + m - 1) // m) * m


def head_kernel(x_ref, wp_ref, bp_ref, wc_ref, bc_ref, out_ref):
    # x_ref:  [TB, 768]  bf16  pooled BERT representation (batch tile)
    # wp_ref: [768, 768] bf16  pooler dense weight (in, out)
    # bp_ref: [1, 768]   f32   pooler dense bias
    # wc_ref: [768, 128] bf16  classifier weight, zero-padded beyond col 2
    # bc_ref: [1, 128]   f32   classifier bias, zero-padded beyond col 2
    # out_ref:[TB, 128]  f32   log-probs (cols >= 2 are padding, sliced outside)

    # BERT pooler: tanh(x @ Wp + bp) — bf16 MXU matmul, f32 accumulate/tanh.
    pooled = jnp.tanh(
        jnp.dot(x_ref[...], wp_ref[...], preferred_element_type=jnp.float32)
        + bp_ref[...]
    )

    # nn.Linear(768, 2) on the lane-padded 128-wide tile.
    logits = (
        jnp.dot(pooled.astype(jnp.bfloat16), wc_ref[...],
                preferred_element_type=jnp.float32)
        + bc_ref[...]
    )

    # Mask padded columns so they do not contribute to the softmax.
    col = jax.lax.broadcasted_iota(jnp.int32, logits.shape, 1)
    logits = jnp.where(col < NUM_CLASSES, logits, jnp.float32(-1e30))

    # nn.LogSoftmax(dim=1) — max-shifted, f32.
    m = jnp.max(logits, axis=1, keepdims=True)
    z = logits - m
    lse = jnp.log(jnp.sum(jnp.exp(z), axis=1, keepdims=True))
    out_ref[...] = (z - lse).astype(out_ref.dtype)


def _choose_tb(B):
    """Pick a batch tile: big enough to amortize ~0.35us/grid-step overhead,
    a multiple of 16 (bf16 sublane packing), >= 2 grid steps when the batch
    allows it (v7x megacore), and small enough (<=512 rows, ~6 MiB VMEM incl.
    double-buffers + f32 intermediates) to fit v5e's 16 MiB scoped default."""
    b16 = _round_up(B, 16)
    if b16 >= 1024:
        return 512                      # multiple of 256, >=2 steps, ~6 MiB VMEM
    if b16 >= 32:
        return _round_up(b16 // 2, 16)  # split in two -> both v7x TCs get work
    return b16                          # tiny batch: single 16-row tile


def newbert_head(x_bf, wp_bf, bp_f32, wc_bf, bc_f32, *, tb=None):
    """Fused pooler(dense+tanh) + classifier + log-softmax head.

    Expects pre-prepared operands (no per-call casts/pads):
      x_bf  [B, 768]   bf16, wp_bf [768, 768] bf16, bp_f32 [1, 768] f32,
      wc_bf [768, 128] bf16 (zero-padded), bc_f32 [1, 128] f32 (zero-padded).
    """
    B = x_bf.shape[0]
    if tb is None:
        tb = _choose_tb(B)
    Bp = _round_up(B, tb)
    if Bp != B:
        x_bf = jnp.pad(x_bf, ((0, Bp - B), (0, 0)))

    grid = (Bp // tb,)
    cost = pl.CostEstimate(
        flops=2 * Bp * HIDDEN * HIDDEN + 2 * Bp * HIDDEN * NUM_CLASSES_PAD,
        transcendentals=Bp * (HIDDEN + NUM_CLASSES_PAD),
        bytes_accessed=(
            x_bf.size * 2 + wp_bf.size * 2 + wc_bf.size * 2
            + bp_f32.size * 4 + bc_f32.size * 4
            + Bp * NUM_CLASSES_PAD * 4
        ),
    )

    out = pl.pallas_call(
        head_kernel,
        out_shape=jax.ShapeDtypeStruct((Bp, NUM_CLASSES_PAD), jnp.float32),
        grid=grid,
        in_specs=[
            pl.BlockSpec((tb, HIDDEN), lambda i: (i, 0)),              # activations: tiled
            pl.BlockSpec((HIDDEN, HIDDEN), lambda i: (0, 0)),          # pooler W: resident
            pl.BlockSpec((1, HIDDEN), lambda i: (0, 0)),               # pooler b: resident
            pl.BlockSpec((HIDDEN, NUM_CLASSES_PAD), lambda i: (0, 0)), # cls W: resident
            pl.BlockSpec((1, NUM_CLASSES_PAD), lambda i: (0, 0)),      # cls b: resident
        ],
        out_specs=pl.BlockSpec((tb, NUM_CLASSES_PAD), lambda i: (i, 0)),
        compiler_params=pltpu.CompilerParams(
            dimension_semantics=("parallel",),
        ),
        cost_estimate=cost,
    )(x_bf, wp_bf, bp_f32, wc_bf, bc_f32)

    return out[:B, :NUM_CLASSES]


def newbert_simple_forward(sent_id, mask, params):
    """Full NewBertSimple.forward: bert stand-in (glue) + fused Pallas head."""
    # --- glue: synthetic BERT pooled output ------------------------------
    emb = params["embedding"][sent_id]                      # [B, S, H]
    maskf = mask.astype(jnp.float32)[:, :, None]            # [B, S, 1]
    denom = jnp.maximum(maskf.sum(axis=1), 1.0)             # [B, 1]
    # Emit the pooled activation directly in bf16 so the cast fuses into the
    # pooling reduction instead of a separate f32 HBM round trip.
    pooled_in = ((emb * maskf).sum(axis=1) / denom).astype(jnp.bfloat16)
    # --- Pallas kernel: pooler + classifier + log-softmax ----------------
    return newbert_head(
        pooled_in,
        params["pooler_w"], params["pooler_b"],
        params["cls_w"], params["cls_b"],
    )


def init_params(key, vocab_size=100):
    """Weights are stored kernel-ready: bf16 MXU operands, f32 biases, and the
    2-class classifier already zero-padded to 128 lanes (no per-call prep)."""
    k0, k1, k2, k3, k4 = jax.random.split(key, 5)
    cls_w = jax.random.normal(k3, (HIDDEN, NUM_CLASSES), jnp.float32) * 0.02
    cls_b = jax.random.normal(k4, (1, NUM_CLASSES), jnp.float32) * 0.02
    return {
        "embedding": jax.random.normal(k0, (vocab_size, HIDDEN), jnp.float32) * 0.02,
        "pooler_w": (jax.random.normal(k1, (HIDDEN, HIDDEN), jnp.float32) * 0.02
                     ).astype(jnp.bfloat16),
        "pooler_b": (jax.random.normal(k2, (1, HIDDEN), jnp.float32) * 0.02
                     ).astype(jnp.float32),
        "cls_w": jnp.pad(cls_w, ((0, 0), (0, NUM_CLASSES_PAD - NUM_CLASSES))
                         ).astype(jnp.bfloat16),
        "cls_b": jnp.pad(cls_b, ((0, 0), (0, NUM_CLASSES_PAD - NUM_CLASSES))
                         ).astype(jnp.float32),
    }


if __name__ == "__main__":
    key = jax.random.PRNGKey(0)
    kp, kid, kmask = jax.random.split(key, 3)

    B, S, VOCAB = 8, 8, 100
    params = init_params(kp, vocab_size=VOCAB)

    sent_id = jax.random.randint(kid, (B, S), 0, VOCAB, dtype=jnp.int32)
    mask = (jax.random.uniform(kmask, (B, S)) > 0.2).astype(jnp.int32)

    out = jax.jit(newbert_simple_forward)(sent_id, mask, params)
    out = jax.block_until_ready(out)

    # sanity: log-softmax rows must sum (in prob space) to 1
    row_sums = jnp.exp(out).sum(axis=1)
    assert out.shape == (B, NUM_CLASSES)
    assert bool(jnp.all(jnp.isfinite(out)))
    assert bool(jnp.allclose(row_sums, 1.0, atol=1e-3))

    print("KERNEL_OK")
</pallas_src>

<mosaic_0001>
module attributes {stable_mosaic.version = 11 : i64} {
  func.func @head_kernel(%arg0: i32, %arg1: memref<16x768xbf16, #tpu.memory_space<vmem>>, %arg2: memref<768x768xbf16, #tpu.memory_space<vmem>>, %arg3: memref<1x768xf32, #tpu.memory_space<vmem>>, %arg4: memref<768x128xbf16, #tpu.memory_space<vmem>>, %arg5: memref<1x128xf32, #tpu.memory_space<vmem>>, %arg6: memref<16x128xf32, #tpu.memory_space<vmem>>) attributes {dimension_semantics = [#tpu.dimension_semantics<parallel>], iteration_bounds = array<i64: 1>, scalar_prefetch = 0 : i64, scratch_operands = 0 : i64, tpu.core_type = #tpu.core_type<tc>, window_params = [{transform_indices = @transform_0, window_bounds = array<i64: 16, 768>}, {pipeline_mode = #tpu.pipeline_mode<synchronous>, transform_indices = @transform_1, window_bounds = array<i64: 768, 768>}, {pipeline_mode = #tpu.pipeline_mode<synchronous>, transform_indices = @transform_2, window_bounds = array<i64: 1, 768>}, {pipeline_mode = #tpu.pipeline_mode<synchronous>, transform_indices = @transform_3, window_bounds = array<i64: 768, 128>}, {pipeline_mode = #tpu.pipeline_mode<synchronous>, transform_indices = @transform_4, window_bounds = array<i64: 1, 128>}, {transform_indices = @transform_5, window_bounds = array<i64: 16, 128>}]} {
    %c0 = arith.constant 0 : index
    %c0_0 = arith.constant 0 : index
    %0 = vector.load %arg1[%c0, %c0_0] : memref<16x768xbf16, #tpu.memory_space<vmem>>, vector<16x768xbf16>
    %c0_1 = arith.constant 0 : index
    %c0_2 = arith.constant 0 : index
    %1 = vector.load %arg2[%c0_1, %c0_2] : memref<768x768xbf16, #tpu.memory_space<vmem>>, vector<768x768xbf16>
    %cst = arith.constant dense<0.000000e+00> : vector<16x768xf32>
    %2 = tpu.matmul %0, %1, %cst {dimension_numbers = #tpu.dot_dimension_numbers<[1], [0], [0], [1], [0, 0, 1, 1], [], []>} : vector<16x768xbf16>, vector<768x768xbf16>, vector<16x768xf32> -> vector<16x768xf32>
    %c0_3 = arith.constant 0 : index
    %c0_4 = arith.constant 0 : index
    %3 = vector.load %arg3[%c0_3, %c0_4] : memref<1x768xf32, #tpu.memory_space<vmem>>, vector<1x768xf32>
    %4 = vector.broadcast %3 : vector<1x768xf32> to vector<16x768xf32>
    %5 = arith.addf %2, %4 : vector<16x768xf32>
    %6 = math.tanh %5 : vector<16x768xf32>
    %7 = arith.truncf %6 : vector<16x768xf32> to vector<16x768xbf16>
    %c0_5 = arith.constant 0 : index
    %c0_6 = arith.constant 0 : index
    %8 = vector.load %arg4[%c0_5, %c0_6] : memref<768x128xbf16, #tpu.memory_space<vmem>>, vector<768x128xbf16>
    %cst_7 = arith.constant dense<0.000000e+00> : vector<16x128xf32>
    %9 = tpu.matmul %7, %8, %cst_7 {dimension_numbers = #tpu.dot_dimension_numbers<[1], [0], [0], [1], [0, 0, 1, 1], [], []>} : vector<16x768xbf16>, vector<768x128xbf16>, vector<16x128xf32> -> vector<16x128xf32>
    %c0_8 = arith.constant 0 : index
    %c0_9 = arith.constant 0 : index
    %10 = vector.load %arg5[%c0_8, %c0_9] : memref<1x128xf32, #tpu.memory_space<vmem>>, vector<1x128xf32>
    %11 = vector.broadcast %10 : vector<1x128xf32> to vector<16x128xf32>
    %12 = arith.addf %9, %11 : vector<16x128xf32>
    %13 = tpu.iota {dimensions = array<i32: 1>} : vector<16x128xi32>
    %c2_i32 = arith.constant 2 : i32
    %14 = vector.broadcast %c2_i32 : i32 to vector<16x128xi32>
    %15 = arith.cmpi slt, %13, %14 : vector<16x128xi32>
    %cst_10 = arith.constant -1.000000e+30 : f32
    %16 = vector.broadcast %cst_10 : f32 to vector<16x128xf32>
    %17 = arith.select %15, %12, %16 : vector<16x128xi1>, vector<16x128xf32>
    %cst_11 = arith.constant dense<0xFF800000> : vector<16xf32>
    %18 = vector.multi_reduction <maximumf>, %17, %cst_11 [1] : vector<16x128xf32> to vector<16xf32>
    %19 = vector.shape_cast %18 : vector<16xf32> to vector<16x1xf32>
    %20 = vector.broadcast %19 : vector<16x1xf32> to vector<16x128xf32>
    %21 = arith.subf %17, %20 : vector<16x128xf32>
    %22 = math.exp %21 : vector<16x128xf32>
    %cst_12 = arith.constant dense<0.000000e+00> : vector<16xf32>
    %23 = vector.multi_reduction <add>, %22, %cst_12 [1] : vector<16x128xf32> to vector<16xf32>
    %24 = vector.shape_cast %23 : vector<16xf32> to vector<16x1xf32>
    %25 = math.log %24 : vector<16x1xf32>
    %26 = vector.broadcast %25 : vector<16x1xf32> to vector<16x128xf32>
    %27 = arith.subf %21, %26 : vector<16x128xf32>
    %c0_13 = arith.constant 0 : index
    %c0_14 = arith.constant 0 : index
    %28 = vector.load %arg6[%c0_13, %c0_14] : memref<16x128xf32, #tpu.memory_space<vmem>>, vector<16x128xf32>
    tpu.vector_store %arg6[%c0_13, %c0_14], %27 {strides = array<i32>} : memref<16x128xf32, #tpu.memory_space<vmem>>, vector<16x128xf32>,
    return
  }
  func.func @transform_0(%arg0: i32) -> (i32, i32) {
    %c0_i32 = arith.constant 0 : i32
    %c0_i32_0 = arith.constant 0 : i32
    return %arg0, %c0_i32 : i32, i32
  }
  func.func @transform_1(%arg0: i32) -> (i32, i32) {
    %c0_i32 = arith.constant 0 : i32
    %c0_i32_0 = arith.constant 0 : i32
    %c0_i32_1 = arith.constant 0 : i32
    return %c0_i32, %c0_i32_0 : i32, i32
  }
  func.func @transform_2(%arg0: i32) -> (i32, i32) {
    %c0_i32 = arith.constant 0 : i32
    %c0_i32_0 = arith.constant 0 : i32
    %c0_i32_1 = arith.constant 0 : i32
    return %c0_i32, %c0_i32_0 : i32, i32
  }
  func.func @transform_3(%arg0: i32) -> (i32, i32) {
    %c0_i32 = arith.constant 0 : i32
    %c0_i32_0 = arith.constant 0 : i32
    %c0_i32_1 = arith.constant 0 : i32
    return %c0_i32, %c0_i32_0 : i32, i32
  }
  func.func @transform_4(%arg0: i32) -> (i32, i32) {
    %c0_i32 = arith.constant 0 : i32
    %c0_i32_0 = arith.constant 0 : i32
    %c0_i32_1 = arith.constant 0 : i32
    return %c0_i32, %c0_i32_0 : i32, i32
  }
  func.func @transform_5(%arg0: i32) -> (i32, i32) {
    %c0_i32 = arith.constant 0 : i32
    %c0_i32_0 = arith.constant 0 : i32
    return %arg0, %c0_i32 : i32, i32
  }
}

</mosaic_0001>

<bundles_post_ra>
// kernel: newbert_simple_forward.1
= control target key start
LH: loop header
LB: loop body
LE: loop exit
PB: predicated region body
PF: predicated region fallthrough
CT: control target
= control target key end

     0   :  { %s6644_s1 = inlined_call_operand.vmem [shape: bf16[768,768], index: 1, kind: input, shape index: {}]   ;;  %s6645_s0 = inlined_call_operand.vmem [shape: bf16[16,768], index: 0, kind: input, shape index: {}]   ;;  %s6646_s2 = inlined_call_operand.vmem [shape: f32[1,768], index: 2, kind: input, shape index: {}]   ;;  %s6647_s3 = inlined_call_operand.vmem [shape: bf16[768,128], index: 3, kind: input, shape index: {}]   ;;  %s6648_s4 = inlined_call_operand.vmem [shape: f32[1,128], index: 4, kind: input, shape index: {}]   ;;  %s6649_s5 = inlined_call_operand.vmem [shape: f32[16,128], index: 5, kind: output, shape index: {}]  }
   0x1   :  { %v3017_v0 = vld [vmem:[%s6644_s1 + $0x150] sm:$0xf]  ;;  %v4242_v1 = vld [vmem:[%s6644_s1 + $0x164] sm:$0xf0]  ;;  %v2993_v11 = vld [vmem:[%s6644_s1 + $0x120] sm:$0xf] }
   0x2   :  { %v3209_v2 = vld [vmem:[%s6644_s1 + $0x2d0] sm:$0xf]  ;;  %v3018_v3 = vor.u32 %v4242_v1, %v3017_v0  ;;  %v4290_v4 = vld [vmem:[%s6644_s1 + $0x2e4] sm:$0xf0]  ;;  %v4236_v13 = vld [vmem:[%s6644_s1 + $0x134] sm:$0xf0] }
   0x3   :  { %v3401_v5 = vld [vmem:[%s6644_s1 + $0x450] sm:$0xf]  ;;  %v4338_v6 = vld [vmem:[%s6644_s1 + $0x464] sm:$0xf0]  ;;  %v3210_v7 = vor.u32 %v4290_v4, %v3209_v2  ;;  %v3185_v14 = vld [vmem:[%s6644_s1 + $0x2a0] sm:$0xf]  ;;  %v2994_v16 = vor.u32 %v4236_v13, %v2993_v11 }
   0x4   :  { %v3402_v8 = vor.u32 %v4338_v6, %v3401_v5  ;;  %v3593_v9 = vld [vmem:[%s6644_s1 + $0x5d0] sm:$0xf]  ;;  %v4386_v10 = vld [vmem:[%s6644_s1 + $0x5e4] sm:$0xf0]  ;;  %1798 = vmatpush.bf16.msra.mxu0 %v3018_v3  ;;  %v4284_v15 = vld [vmem:[%s6644_s1 + $0x2b4] sm:$0xf0] }
   0x5   :  { %v3594_v12 = vor.u32 %v4386_v10, %v3593_v9  ;;  %1812 = vmatpush.bf16.msra.mxu1 %v3210_v7  ;;  %v3186_v17 = vor.u32 %v4284_v15, %v3185_v14  ;;  %v3377_v18 = vld [vmem:[%s6644_s1 + $0x420] sm:$0xf]  ;;  %v4332_v19 = vld [vmem:[%s6644_s1 + $0x434] sm:$0xf0]  ;;  %v2969_v23 = vld [vmem:[%s6644_s1 + $0xf0] sm:$0xf] }
   0x6   :  { %1826 = vmatpush.bf16.msra.mxu2 %v3402_v8  ;;  %v3569_v20 = vld [vmem:[%s6644_s1 + $0x5a0] sm:$0xf]  ;;  %v3378_v21 = vor.u32 %v4332_v19, %v3377_v18  ;;  %v4380_v22 = vld [vmem:[%s6644_s1 + $0x5b4] sm:$0xf0]  ;;  %v4230_v24 = vld [vmem:[%s6644_s1 + $0x104] sm:$0xf0] }
   0x7   :  { %1840 = vmatpush.bf16.msra.mxu3 %v3594_v12  ;;  %v3570_v25 = vor.u32 %v4380_v22, %v3569_v20  ;;  %v3161_v26 = vld [vmem:[%s6644_s1 + $0x270] sm:$0xf]  ;;  %v4278_v27 = vld [vmem:[%s6644_s1 + $0x284] sm:$0xf0]  ;;  %v2970_v29 = vor.u32 %v4230_v24, %v2969_v23  ;;  %v2945_v35 = vld [vmem:[%s6644_s1 + $0xc0] sm:$0xf] }
   0x8   :  { %v3353_v28 = vld [vmem:[%s6644_s1 + $0x3f0] sm:$0xf]  ;;  %1799 = vmatpush.bf16.msra.mxu0 %v2994_v16  ;;  %v4326_v30 = vld [vmem:[%s6644_s1 + $0x404] sm:$0xf0]  ;;  %v3162_v33 = vor.u32 %v4278_v27, %v3161_v26  ;;  %v4224_v36 = vld [vmem:[%s6644_s1 + $0xd4] sm:$0xf0] }
   0x9   :  { %v3545_v31 = vld [vmem:[%s6644_s1 + $0x570] sm:$0xf]  ;;  %v4374_v32 = vld [vmem:[%s6644_s1 + $0x584] sm:$0xf0]  ;;  %1813 = vmatpush.bf16.msra.mxu1 %v3186_v17  ;;  %v3354_v34 = vor.u32 %v4326_v30, %v3353_v28  ;;  %v3137_v37 = vld [vmem:[%s6644_s1 + $0x240] sm:$0xf]  ;;  %v2946_v44 = vor.u32 %v4224_v36, %v2945_v35 }
   0xa   :  { %1827 = vmatpush.bf16.msra.mxu2 %v3378_v21  ;;  %v3546_v38 = vor.u32 %v4374_v32, %v3545_v31  ;;  %v4272_v39 = vld [vmem:[%s6644_s1 + $0x254] sm:$0xf0]  ;;  %v3329_v40 = vld [vmem:[%s6644_s1 + $0x3c0] sm:$0xf]  ;;  %v2921_v47 = vld [vmem:[%s6644_s1 + $0x90] sm:$0xf] }
   0xb   :  { %1841 = vmatpush.bf16.msra.mxu3 %v3570_v25  ;;  %v4320_v41 = vld [vmem:[%s6644_s1 + $0x3d4] sm:$0xf0]  ;;  %v3521_v42 = vld [vmem:[%s6644_s1 + $0x540] sm:$0xf]  ;;  %v3138_v45 = vor.u32 %v4272_v39, %v3137_v37  ;;  %v4218_v48 = vld [vmem:[%s6644_s1 + $0xa4] sm:$0xf0] }
   0xc   :  { %v4368_v43 = vld [vmem:[%s6644_s1 + $0x554] sm:$0xf0]  ;;  %1800 = vmatpush.bf16.msra.mxu0 %v2970_v29  ;;  %v3330_v46 = vor.u32 %v4320_v41, %v3329_v40  ;;  %v3113_v49 = vld [vmem:[%s6644_s1 + $0x210] sm:$0xf]  ;;  %v4266_v51 = vld [vmem:[%s6644_s1 + $0x224] sm:$0xf0]  ;;  %v2922_v56 = vor.u32 %v4218_v48, %v2921_v47 }
   0xd   :  { %1814 = vmatpush.bf16.msra.mxu1 %v3162_v33  ;;  %v3522_v50 = vor.u32 %v4368_v43, %v3521_v42  ;;  %v3305_v52 = vld [vmem:[%s6644_s1 + $0x390] sm:$0xf]  ;;  %v4314_v53 = vld [vmem:[%s6644_s1 + $0x3a4] sm:$0xf0]  ;;  %v3114_v57 = vor.u32 %v4266_v51, %v3113_v49  ;;  %v2897_v59 = vld [vmem:[%s6644_s1 + $0x60] sm:$0xf] }
   0xe   :  { %1828 = vmatpush.bf16.msra.mxu2 %v3354_v34  ;;  %v3497_v54 = vld [vmem:[%s6644_s1 + $0x510] sm:$0xf]  ;;  %v4362_v55 = vld [vmem:[%s6644_s1 + $0x524] sm:$0xf0]  ;;  %v3306_v58 = vor.u32 %v4314_v53, %v3305_v52  ;;  %v4212_v60 = vld [vmem:[%s6644_s1 + $0x74] sm:$0xf0] }
   0xf   :  { %1842 = vmatpush.bf16.msra.mxu3 %v3546_v38  ;;  %v3089_v61 = vld [vmem:[%s6644_s1 + $0x1e0] sm:$0xf]  ;;  %v3498_v62 = vor.u32 %v4362_v55, %v3497_v54  ;;  %v4260_v63 = vld [vmem:[%s6644_s1 + $0x1f4] sm:$0xf0]  ;;  %v2898_v4 = vor.u32 %v4212_v60, %v2897_v59  ;;  %v2873_v7 = vld [vmem:[%s6644_s1 + $0x30] sm:$0xf] }
  0x10   :  { %1801 = vmatpush.bf16.msra.mxu0 %v2946_v44  ;;  %v3281_v0 = vld [vmem:[%s6644_s1 + $0x360] sm:$0xf]  ;;  %v4308_v1 = vld [vmem:[%s6644_s1 + $0x374] sm:$0xf0]  ;;  %v3090_v5 = vor.u32 %v4260_v63, %v3089_v61  ;;  %v4206_v8 = vld [vmem:[%s6644_s1 + $0x44] sm:$0xf0] }
  0x11   :  { %1815 = vmatpush.bf16.msra.mxu1 %v3138_v45  ;;  %v3473_v2 = vld [vmem:[%s6644_s1 + $0x4e0] sm:$0xf]  ;;  %v4356_v3 = vld [vmem:[%s6644_s1 + $0x4f4] sm:$0xf0]  ;;  %v3282_v6 = vor.u32 %v4308_v1, %v3281_v0  ;;  %v3065_v9 = vld [vmem:[%s6644_s1 + $0x1b0] sm:$0xf]  ;;  %v2874_v16 = vor.u32 %v4206_v8, %v2873_v7 }
  0x12   :  { %1829 = vmatpush.bf16.msra.mxu2 %v3330_v46  ;;  %v3474_v10 = vor.u32 %v4356_v3, %v3473_v2  ;;  %v4254_v11 = vld [vmem:[%s6644_s1 + $0x1c4] sm:$0xf0]  ;;  %v3257_v12 = vld [vmem:[%s6644_s1 + $0x330] sm:$0xf]  ;;  %v2849_v17 = vld [vmem:[%s6644_s1] sm:$0xf] }
  0x13   :  { %1843 = vmatpush.bf16.msra.mxu3 %v3522_v50  ;;  %v4302_v13 = vld [vmem:[%s6644_s1 + $0x344] sm:$0xf0]  ;;  %v3449_v14 = vld [vmem:[%s6644_s1 + $0x4b0] sm:$0xf]  ;;  %v4200_v18 = vld [vmem:[%s6644_s1 + $0x14] sm:$0xf0]  ;;  %v3066_v19 = vor.u32 %v4254_v11, %v3065_v9 }
  0x14   :  { %1802 = vmatpush.bf16.msra.mxu0 %v2922_v56  ;;  %v4350_v15 = vld [vmem:[%s6644_s1 + $0x4c4] sm:$0xf0]  ;;  %v3258_v20 = vor.u32 %v4302_v13, %v3257_v12  ;;  %v3041_v21 = vld [vmem:[%s6644_s1 + $0x180] sm:$0xf]  ;;  %v4248_v22 = vld [vmem:[%s6644_s1 + $0x194] sm:$0xf0]  ;;  %v2850_v31 = vor.u32 %v4200_v18, %v2849_v17 }
  0x15   :  { %1816 = vmatpush.bf16.msra.mxu1 %v3114_v57  ;;  %v3233_v23 = vld [vmem:[%s6644_s1 + $0x300] sm:$0xf]  ;;  %v3450_v24 = vor.u32 %v4350_v15, %v3449_v14  ;;  %v4296_v25 = vld [vmem:[%s6644_s1 + $0x314] sm:$0xf0]  ;;  %v3785_v28 = vld [vmem:[%s6644_s1 + $0x750] sm:$0xf]  ;;  %v3042_v35 = vor.u32 %v4248_v22, %v3041_v21 }
  0x16   :  { %1830 = vmatpush.bf16.msra.mxu2 %v3306_v58  ;;  %v3425_v26 = vld [vmem:[%s6644_s1 + $0x480] sm:$0xf]  ;;  %v4344_v27 = vld [vmem:[%s6644_s1 + $0x494] sm:$0xf0]  ;;  %v4434_v29 = vld [vmem:[%s6644_s1 + $0x764] sm:$0xf0]  ;;  %v3234_v36 = vor.u32 %v4296_v25, %v3233_v23 }
  0x17   :  { %1844 = vmatpush.bf16.msra.mxu3 %v3498_v62  ;;  %v3977_v30 = vld [vmem:[%s6644_s1 + $0x8d0] sm:$0xf]  ;;  %v4482_v32 = vld [vmem:[%s6644_s1 + $0x8e4] sm:$0xf0]  ;;  %v4239_v33 = vld [vmem:[%s6644_s1 + $0x154] sm:$0xf]  ;;  %v3426_v39 = vor.u32 %v4344_v27, %v3425_v26  ;;  %v3786_v40 = vor.u32 %v4434_v29, %v3785_v28 }
  0x18   :  { %1803 = vmatpush.bf16.msra.mxu0 %v2898_v4  ;;  %v3019_v34 = vld [vmem:[%s6644_s1 + $0x168] sm:$0xf0]  ;;  %v4287_v37 = vld [vmem:[%s6644_s1 + $0x2d4] sm:$0xf]  ;;  %v3761_v41 = vld [vmem:[%s6644_s1 + $0x720] sm:$0xf]  ;;  %v3978_v42 = vor.u32 %v4482_v32, %v3977_v30 }
  0x19   :  { %1817 = vmatpush.bf16.msra.mxu1 %v3090_v5  ;;  %v3211_v38 = vld [vmem:[%s6644_s1 + $0x2e8] sm:$0xf0]  ;;  %v3022_v43 = vor.u32 %v4239_v33, %v3019_v34  ;;  %v4428_v44 = vld [vmem:[%s6644_s1 + $0x734] sm:$0xf0]  ;;  %v3953_v45 = vld [vmem:[%s6644_s1 + $0x8a0] sm:$0xf] }
  0x1a   :  { %1831 = vmatpush.bf16.msra.mxu2 %v3282_v6  ;;  %v4476_v46 = vld [vmem:[%s6644_s1 + $0x8b4] sm:$0xf0]  ;;  %v3214_v47 = vor.u32 %v4287_v37, %v3211_v38  ;;  %v4233_v48 = vld [vmem:[%s6644_s1 + $0x124] sm:$0xf]  ;;  %v2995_v49 = vld [vmem:[%s6644_s1 + $0x138] sm:$0xf0]  ;;  %v3762_v54 = vor.u32 %v4428_v44, %v3761_v41 }
  0x1b   :  { %1845 = vmatpush.bf16.msra.mxu3 %v3474_v10  ;;  %v4281_v50 = vld [vmem:[%s6644_s1 + $0x2a4] sm:$0xf]  ;;  %v3187_v51 = vld [vmem:[%s6644_s1 + $0x2b8] sm:$0xf0]  ;;  %v2825_v52 = vld [vmem:[%s6645_s0] sm:$0xf]  ;;  %v3954_v58 = vor.u32 %v4476_v46, %v3953_v45  ;;  %v2998_v59 = vor.u32 %v4233_v48, %v2995_v49 }
  0x1c   :  { %1804 = vmatpush.bf16.msra.mxu0 %v2874_v16  ;;  %v4194_v53 = vld [vmem:[%s6645_s0 + $0x14] sm:$0xf0]  ;;  %v3737_v55 = vld [vmem:[%s6644_s1 + $0x6f0] sm:$0xf]  ;;  %v4422_v56 = vld [vmem:[%s6644_s1 + $0x704] sm:$0xf0]  ;;  %v3190_v63 = vor.u32 %v4281_v50, %v3187_v51 }
  0x1d   :  { %1818 = vmatpush.bf16.msra.mxu1 %v3066_v19  ;;  %v4848_v57 = vor.u32 %v4194_v53, %v2825_v52  ;;  %v3929_v60 = vld [vmem:[%s6644_s1 + $0x870] sm:$0xf]  ;;  %v4470_v61 = vld [vmem:[%s6644_s1 + $0x884] sm:$0xf0]  ;;  %v4227_v62 = vld [vmem:[%s6644_s1 + $0xf4] sm:$0xf]  ;;  %v3738_v7 = vor.u32 %v4422_v56, %v3737_v55 }
  0x1e   :  { %1832 = vmatpush.bf16.msra.mxu2 %v3258_v20  ;;  %v2971_v0 = vld [vmem:[%s6644_s1 + $0x108] sm:$0xf0]  ;;  %v4191_v1 = vld [vmem:[%s6645_s0 + $0x4] sm:$0xf]  ;;  %v2827_v2 = vld [vmem:[%s6645_s0 + $0x18] sm:$0xf0]  ;;  %v3930_v11 = vor.u32 %v4470_v61, %v3929_v60 }
  0x1f   :  { %1846 = vmatpush.bf16.msra.mxu3 %v3450_v24  ;;  %v4275_v3 = vld [vmem:[%s6644_s1 + $0x274] sm:$0xf]  ;;  %v3163_v4 = vld [vmem:[%s6644_s1 + $0x288] sm:$0xf0]  ;;  %v3713_v5 = vld [vmem:[%s6644_s1 + $0x6c0] sm:$0xf]  ;;  %v4878_v6 = vor.u32 %v4191_v1, %v2827_v2  ;;  %v2974_v12 = vor.u32 %v4227_v62, %v2971_v0 }
  0x20   :  { %1805 = vmatpush.bf16.msra.mxu0 %v2850_v31  ;;  %v4416_v8 = vld [vmem:[%s6644_s1 + $0x6d4] sm:$0xf0]  ;;  %v3905_v9 = vld [vmem:[%s6644_s1 + $0x840] sm:$0xf]  ;;  %v4221_v13 = vld [vmem:[%s6644_s1 + $0xc4] sm:$0xf]  ;;  %v3166_v16 = vor.u32 %v4275_v3, %v3163_v4 }
  0x21   :  { %1819 = vmatpush.bf16.msra.mxu1 %v3042_v35  ;;  %v4464_v10 = vld [vmem:[%s6644_s1 + $0x854] sm:$0xf0]  ;;  %v2947_v14 = vld [vmem:[%s6644_s1 + $0xd8] sm:$0xf0]  ;;  %v2833_v15 = vld [vmem:[%s6645_s0 + $0x8] sm:$0xf]  ;;  %v3714_v24 = vor.u32 %v4416_v8, %v3713_v5 }
  0x22   :  { %1833 = vmatpush.bf16.msra.mxu2 %v3234_v36  ;;  %v4195_v17 = vld [vmem:[%s6645_s0 + $0x1c] sm:$0xf0]  ;;  %v4192_v18 = vld [vmem:[%s6645_s0 + $0xc] sm:$0xf]  ;;  %v2835_v19 = vld [vmem:[%s6645_s0 + $0x20] sm:$0xf0]  ;;  %v3906_v25 = vor.u32 %v4464_v10, %v3905_v9  ;;  %v2950_v26 = vor.u32 %v4221_v13, %v2947_v14 }
  0x23   :  { %1847 = vmatpush.bf16.msra.mxu3 %v3426_v39  ;;  %1806 = vmatmul.bf16.vlgmr.msra.gmra.mxu0 %v4848_v57  ;;  %v4269_v20 = vld [vmem:[%s6644_s1 + $0x244] sm:$0xf]  ;;  %v3139_v21 = vld [vmem:[%s6644_s1 + $0x258] sm:$0xf0]  ;;  %v4914_v22 = vor.u32 %v4195_v17, %v2833_v15  ;;  %v4916_v23 = vor.u32 %v4192_v18, %v2835_v19  ;;  %v3689_v27 = vld [vmem:[%s6644_s1 + $0x690] sm:$0xf] }
  0x24   :  { %1854 = vmatpush.bf16.msrb.mxu0 %v3786_v40  ;;  %1820 = vmatmul.bf16.vlgmr.msra.gmra.mxu1 %v4878_v6  ;;  %v4410_v28 = vld [vmem:[%s6644_s1 + $0x6a4] sm:$0xf0]  ;;  %v3881_v29 = vld [vmem:[%s6644_s1 + $0x810] sm:$0xf]  ;;  %v3142_v30 = vor.u32 %v4269_v20, %v3139_v21  ;;  %v4215_v32 = vld [vmem:[%s6644_s1 + $0x94] sm:$0xf] }
  0x25   :  { %1868 = vmatpush.bf16.msrb.mxu1 %v3978_v42  ;;  %v4458_v31 = vld [vmem:[%s6644_s1 + $0x824] sm:$0xf0]  ;;  %v2923_v33 = vld [vmem:[%s6644_s1 + $0xa8] sm:$0xf0]  ;;  %1834 = vmatmul.bf16.vlgmr.msra.gmra.mxu2 %v4914_v22  ;;  %v4263_v34 = vld [vmem:[%s6644_s1 + $0x214] sm:$0xf]  ;;  %v3690_v36 = vor.u32 %v4410_v28, %v3689_v27 }
  0x26   :  { %1882 = vmatpush.bf16.msrb.mxu2 %v3022_v43  ;;  %v3115_v35 = vld [vmem:[%s6644_s1 + $0x228] sm:$0xf0]  ;;  %1848 = vmatmul.bf16.vlgmr.msra.gmra.mxu3 %v4916_v23  ;;  %v3882_v37 = vor.u32 %v4458_v31, %v3881_v29  ;;  %v2926_v38 = vor.u32 %v4215_v32, %v2923_v33  ;;  %v3665_v39 = vld [vmem:[%s6644_s1 + $0x660] sm:$0xf]  ;;  %v4404_v40 = vld [vmem:[%s6644_s1 + $0x674] sm:$0xf0] }
  0x27   :  { %1896 = vmatpush.bf16.msrb.mxu3 %v3214_v47  ;;  %v3857_v41 = vld [vmem:[%s6644_s1 + $0x7e0] sm:$0xf]  ;;  %v3118_v42 = vor.u32 %v4263_v34, %v3115_v35  ;;  %v4452_v43 = vld [vmem:[%s6644_s1 + $0x7f4] sm:$0xf0]  ;;  %v4209_v44 = vld [vmem:[%s6644_s1 + $0x64] sm:$0xf]  ;;  %v3666_v48 = vor.u32 %v4404_v40, %v3665_v39 }
  0x28   :  { %1855 = vmatpush.bf16.msrb.mxu0 %v3762_v54  ;;  %v2899_v45 = vld [vmem:[%s6644_s1 + $0x78] sm:$0xf0]  ;;  %v4257_v46 = vld [vmem:[%s6644_s1 + $0x1e4] sm:$0xf]  ;;  %v3858_v49 = vor.u32 %v4452_v43, %v3857_v41  ;;  %v3641_v51 = vld [vmem:[%s6644_s1 + $0x630] sm:$0xf] }
  0x29   :  { %1869 = vmatpush.bf16.msrb.mxu1 %v3954_v58  ;;  %v3091_v47 = vld [vmem:[%s6644_s1 + $0x1f8] sm:$0xf0]  ;;  %v2902_v50 = vor.u32 %v4209_v44, %v2899_v45  ;;  %v4398_v52 = vld [vmem:[%s6644_s1 + $0x644] sm:$0xf0]  ;;  %v3833_v53 = vld [vmem:[%s6644_s1 + $0x7b0] sm:$0xf] }
  0x2a   :  { %1883 = vmatpush.bf16.msrb.mxu2 %v2998_v59  ;;  %v3094_v54 = vor.u32 %v4257_v46, %v3091_v47  ;;  %v4446_v55 = vld [vmem:[%s6644_s1 + $0x7c4] sm:$0xf0]  ;;  %v4203_v56 = vld [vmem:[%s6644_s1 + $0x34] sm:$0xf]  ;;  %v2875_v58 = vld [vmem:[%s6644_s1 + $0x48] sm:$0xf0]  ;;  %v3642_v61 = vor.u32 %v4398_v52, %v3641_v51 }
  0x2b   :  { %1897 = vmatpush.bf16.msrb.mxu3 %v3190_v63  ;;  %v4251_v59 = vld [vmem:[%s6644_s1 + $0x1b4] sm:$0xf]  ;;  %v3067_v60 = vld [vmem:[%s6644_s1 + $0x1c8] sm:$0xf0]  ;;  %v3617_v62 = vld [vmem:[%s6644_s1 + $0x600] sm:$0xf]  ;;  %v3834_v1 = vor.u32 %v4446_v55, %v3833_v53  ;;  %v2878_v2 = vor.u32 %v4203_v56, %v2875_v58 }
  0x2c   :  { %1856 = vmatpush.bf16.msrb.mxu0 %v3738_v7  ;;  %v4392_v63 = vld [vmem:[%s6644_s1 + $0x614] sm:$0xf0]  ;;  %v3809_v0 = vld [vmem:[%s6644_s1 + $0x780] sm:$0xf]  ;;  %v4197_v4 = vld [vmem:[%s6644_s1 + $0x4] sm:$0xf]  ;;  %v3070_v7 = vor.u32 %v4251_v59, %v3067_v60 }
  0x2d   :  { %1870 = vmatpush.bf16.msrb.mxu1 %v3930_v11  ;;  %v4440_v3 = vld [vmem:[%s6644_s1 + $0x794] sm:$0xf0]  ;;  %v2851_v5 = vld [vmem:[%s6644_s1 + $0x18] sm:$0xf0]  ;;  %v4245_v8 = vld [vmem:[%s6644_s1 + $0x184] sm:$0xf]  ;;  %v3618_v14 = vor.u32 %v4392_v63, %v3617_v62 }
  0x2e   :  { %1884 = vmatpush.bf16.msrb.mxu2 %v2974_v12  ;;  %v3043_v9 = vld [vmem:[%s6644_s1 + $0x198] sm:$0xf0]  ;;  %v4335_v10 = vld [vmem:[%s6644_s1 + $0x454] sm:$0xf]  ;;  %v3403_v11 = vld [vmem:[%s6644_s1 + $0x468] sm:$0xf0]  ;;  %v3810_v18 = vor.u32 %v4440_v3, %v3809_v0  ;;  %v2854_v19 = vor.u32 %v4197_v4, %v2851_v5 }
  0x2f   :  { %1898 = vmatpush.bf16.msrb.mxu3 %v3166_v16  ;;  %v4383_v12 = vld [vmem:[%s6644_s1 + $0x5d4] sm:$0xf]  ;;  %v3595_v13 = vld [vmem:[%s6644_s1 + $0x5e8] sm:$0xf0]  ;;  %v2841_v21 = vld [vmem:[%s6645_s0 + $0x10] sm:$0xf] }
  0x30   :  { %1857 = vmatpush.bf16.msrb.mxu0 %v3714_v24  ;;  %v4431_v15 = vld [vmem:[%s6644_s1 + $0x754] sm:$0xf]  ;;  %v3787_v16 = vld [vmem:[%s6644_s1 + $0x768] sm:$0xf0]  ;;  %v4196_v24 = vld [vmem:[%s6645_s0 + $0x24] sm:$0xf0]  ;;  %v3598_v29 = vor.u32 %v4383_v12, %v3595_v13 }
  0x31   :  { %1871 = vmatpush.bf16.msrb.mxu1 %v3906_v25  ;;  %v4479_v17 = vld [vmem:[%s6644_s1 + $0x8d4] sm:$0xf]  ;;  %v3979_v20 = vld [vmem:[%s6644_s1 + $0x8e8] sm:$0xf0]  ;;  %v3046_v25 = vor.u32 %v4245_v8, %v3043_v9  ;;  %v4329_v31 = vld [vmem:[%s6644_s1 + $0x424] sm:$0xf]  ;;  %v5061_v35 = vor.u32 %v4196_v24, %v2841_v21 }
  0x32   :  { %1885 = vmatpush.bf16.msrb.mxu2 %v2950_v26  ;;  %v3406_v26 = vor.u32 %v4335_v10, %v3403_v11  ;;  %v4193_v27 = vld [vmem:[%s6645_s0 + $0x14] sm:$0xf]  ;;  %v2843_v28 = vld [vmem:[%s6645_s0 + $0x28] sm:$0xf0]  ;;  %v3379_v32 = vld [vmem:[%s6644_s1 + $0x438] sm:$0xf0]  ;;  %v3982_v34 = vor.u32 %v4479_v17, %v3979_v20 }
  0x33   :  { %1899 = vmatpush.bf16.msrb.mxu3 %v3142_v30  ;;  %v3790_v30 = vor.u32 %v4431_v15, %v3787_v16  ;;  %v4377_v33 = vld [vmem:[%s6644_s1 + $0x5a4] sm:$0xf]  ;;  %v5072_v39 = vor.u32 %v4193_v27, %v2843_v28  ;;  %v3955_v41 = vld [vmem:[%s6644_s1 + $0x8b8] sm:$0xf0]  ;;  %v4323_v45 = vld [vmem:[%s6644_s1 + $0x3f4] sm:$0xf] }
  0x34   :  { %1858 = vmatpush.bf16.msrb.mxu0 %v3690_v36  ;;  %v3571_v36 = vld [vmem:[%s6644_s1 + $0x5b8] sm:$0xf0]  ;;  %v4473_v40 = vld [vmem:[%s6644_s1 + $0x8a4] sm:$0xf]  ;;  %v3355_v46 = vld [vmem:[%s6644_s1 + $0x408] sm:$0xf0] }
  0x35   :  { %1872 = vmatpush.bf16.msrb.mxu1 %v3882_v37  ;;  %v4425_v37 = vld [vmem:[%s6644_s1 + $0x724] sm:$0xf]  ;;  %v3574_v43 = vor.u32 %v4377_v33, %v3571_v36  ;;  %v4371_v47 = vld [vmem:[%s6644_s1 + $0x574] sm:$0xf]  ;;  %v3739_v51 = vld [vmem:[%s6644_s1 + $0x708] sm:$0xf0] }
  0x36   :  { %1886 = vmatpush.bf16.msrb.mxu2 %v2926_v38  ;;  %v3763_v38 = vld [vmem:[%s6644_s1 + $0x738] sm:$0xf0]  ;;  %v4467_v52 = vld [vmem:[%s6644_s1 + $0x874] sm:$0xf]  ;;  %v3931_v53 = vld [vmem:[%s6644_s1 + $0x888] sm:$0xf0] }
  0x37   :  { %1900 = vmatpush.bf16.msrb.mxu3 %v3118_v42  ;;  %v3382_v42 = vor.u32 %v4329_v31, %v3379_v32  ;;  %v3766_v44 = vor.u32 %v4425_v37, %v3763_v38  ;;  %v4317_v58 = vld [vmem:[%s6644_s1 + $0x3c4] sm:$0xf]  ;;  %v3331_v59 = vld [vmem:[%s6644_s1 + $0x3d8] sm:$0xf0]  ;;  %v3307_v8 = vld [vmem:[%s6644_s1 + $0x3a8] sm:$0xf0] }
  0x38   :  { %1859 = vmatpush.bf16.msrb.mxu0 %v3666_v48  ;;  %v3958_v48 = vor.u32 %v4473_v40, %v3955_v41  ;;  %v4365_v60 = vld [vmem:[%s6644_s1 + $0x544] sm:$0xf]  ;;  %v3523_v62 = vld [vmem:[%s6644_s1 + $0x558] sm:$0xf0]  ;;  %v3334_v3 = vor.u32 %v4317_v58, %v3331_v59  ;;  %v4359_v9 = vld [vmem:[%s6644_s1 + $0x514] sm:$0xf] }
  0x39   :  { %1873 = vmatpush.bf16.msrb.mxu1 %v3858_v49  ;;  %v3547_v49 = vld [vmem:[%s6644_s1 + $0x588] sm:$0xf0]  ;;  %v4413_v63 = vld [vmem:[%s6644_s1 + $0x6c4] sm:$0xf]  ;;  %v3715_v0 = vld [vmem:[%s6644_s1 + $0x6d8] sm:$0xf0]  ;;  %v3526_v4 = vor.u32 %v4365_v60, %v3523_v62 }
  0x3a   :  { %1887 = vmatpush.bf16.msrb.mxu2 %v2902_v50  ;;  %v4419_v50 = vld [vmem:[%s6644_s1 + $0x6f4] sm:$0xf]  ;;  %v3550_v55 = vor.u32 %v4371_v47, %v3547_v49  ;;  %v3718_v5 = vor.u32 %v4413_v63, %v3715_v0  ;;  %v3499_v11 = vld [vmem:[%s6644_s1 + $0x528] sm:$0xf0]  ;;  %v3283_v20 = vld [vmem:[%s6644_s1 + $0x378] sm:$0xf0] }
  0x3b   :  { %1901 = vmatpush.bf16.msrb.mxu3 %v3094_v54  ;;  %v3358_v54 = vor.u32 %v4323_v45, %v3355_v46  ;;  %v3742_v56 = vor.u32 %v4419_v50, %v3739_v51  ;;  %v4407_v12 = vld [vmem:[%s6644_s1 + $0x694] sm:$0xf]  ;;  %v3691_v13 = vld [vmem:[%s6644_s1 + $0x6a8] sm:$0xf0]  ;;  %v3502_v17 = vor.u32 %v4359_v9, %v3499_v11  ;;  %v4353_v21 = vld [vmem:[%s6644_s1 + $0x4e4] sm:$0xf] }
  0x3c   :  { %1860 = vmatpush.bf16.msrb.mxu0 %v3642_v61  ;;  %v3934_v61 = vor.u32 %v4467_v52, %v3931_v53  ;;  %v3883_v15 = vld [vmem:[%s6644_s1 + $0x828] sm:$0xf0]  ;;  %v3667_v27 = vld [vmem:[%s6644_s1 + $0x678] sm:$0xf0]  ;;  %v4449_v28 = vld [vmem:[%s6644_s1 + $0x7e4] sm:$0xf] }
  0x3d   :  { %1874 = vmatpush.bf16.msrb.mxu1 %v3834_v1  ;;  %v4461_v1 = vld [vmem:[%s6644_s1 + $0x844] sm:$0xf]  ;;  %v4299_v33 = vld [vmem:[%s6644_s1 + $0x334] sm:$0xf]  ;;  %v3451_v38 = vld [vmem:[%s6644_s1 + $0x4c8] sm:$0xf0] }
  0x3e   :  { %1888 = vmatpush.bf16.msrb.mxu2 %v2878_v2  ;;  %v3907_v2 = vld [vmem:[%s6644_s1 + $0x858] sm:$0xf0]  ;;  %v4347_v36 = vld [vmem:[%s6644_s1 + $0x4b4] sm:$0xf]  ;;  %v3643_v41 = vld [vmem:[%s6644_s1 + $0x648] sm:$0xf0] }
  0x3f   :  { %1902 = vmatpush.bf16.msrb.mxu3 %v3070_v7  ;;  %v4311_v7 = vld [vmem:[%s6644_s1 + $0x394] sm:$0xf]  ;;  %v3910_v10 = vor.u32 %v4461_v1, %v3907_v2  ;;  %v4293_v45 = vld [vmem:[%s6644_s1 + $0x304] sm:$0xf]  ;;  %v3235_v46 = vld [vmem:[%s6644_s1 + $0x318] sm:$0xf0]  ;;  %v3454_v47 = vor.u32 %v4347_v36, %v3451_v38 }
  0x40   :  { %1861 = vmatpush.bf16.msrb.mxu0 %v3618_v14  ;;  %v4455_v14 = vld [vmem:[%s6644_s1 + $0x814] sm:$0xf]  ;;  %v3310_v16 = vor.u32 %v4311_v7, %v3307_v8  ;;  %v4341_v49 = vld [vmem:[%s6644_s1 + $0x484] sm:$0xf]  ;;  %v3427_v50 = vld [vmem:[%s6644_s1 + $0x498] sm:$0xf0]  ;;  %v3238_v60 = vor.u32 %v4293_v45, %v3235_v46 }
  0x41   :  { %1875 = vmatpush.bf16.msrb.mxu1 %v3810_v18  ;;  %v3694_v18 = vor.u32 %v4407_v12, %v3691_v13  ;;  %v3886_v24 = vor.u32 %v4455_v14, %v3883_v15  ;;  %v4395_v40 = vld [vmem:[%s6644_s1 + $0x634] sm:$0xf]  ;;  %v4389_v51 = vld [vmem:[%s6644_s1 + $0x604] sm:$0xf]  ;;  %v3619_v53 = vld [vmem:[%s6644_s1 + $0x618] sm:$0xf0]  ;;  %v3430_v0 = vor.u32 %v4341_v49, %v3427_v50 }
  0x42   :  { %1889 = vmatpush.bf16.msrb.mxu2 %v2854_v19  ;;  %v4305_v19 = vld [vmem:[%s6644_s1 + $0x364] sm:$0xf]  ;;  %v4243_v58 = vld [vmem:[%s6644_s1 + $0x16c] sm:$0xf0]  ;;  %v3217_v59 = vld [vmem:[%s6644_s1 + $0x2d8] sm:$0xf]  ;;  %v3622_v1 = vor.u32 %v4389_v51, %v3619_v53 }
  0x43   :  { %1903 = vmatpush.bf16.msrb.mxu3 %v3046_v25  ;;  %1862 = vmatmul.bf16.vlgmr.msrb.gmra.mxu0 %v5061_v35  ;;  %v3475_v25 = vld [vmem:[%s6644_s1 + $0x4f8] sm:$0xf0]  ;;  %v3409_v62 = vld [vmem:[%s6644_s1 + $0x458] sm:$0xf]  ;;  %v4339_v63 = vld [vmem:[%s6644_s1 + $0x46c] sm:$0xf0] }
  0x44   :  { %1910 = vmatpush.bf16.msra.mxu0 %v3406_v26  ;;  %1876 = vmatmul.bf16.vlgmr.msrb.gmra.mxu1 %v5072_v39  ;;  %v4401_v26 = vld [vmem:[%s6644_s1 + $0x664] sm:$0xf]  ;;  %v3478_v31 = vor.u32 %v4353_v21, %v3475_v25  ;;  %v3601_v2 = vld [vmem:[%s6644_s1 + $0x5d8] sm:$0xf]  ;;  %v3410_v8 = vor.u32 %v4339_v63, %v3409_v62  ;;  %v3001_v9 = vld [vmem:[%s6644_s1 + $0x128] sm:$0xf] }
  0x45   :  { %1924 = vmatpush.bf16.msra.mxu1 %v3598_v29  ;;  %1890 = vmatmul.bf16.vlgmr.msrb.gmra.mxu2 %v4848_v57  ;;  %v3859_v29 = vld [vmem:[%s6644_s1 + $0x7f8] sm:$0xf0]  ;;  %v3670_v32 = vor.u32 %v4401_v26, %v3667_v27  ;;  %v3193_v11 = vld [vmem:[%s6644_s1 + $0x2a8] sm:$0xf]  ;;  %v4285_v13 = vld [vmem:[%s6644_s1 + $0x2bc] sm:$0xf0] }
  0x46   :  { %1938 = vmatpush.bf16.msra.mxu2 %v3790_v30  ;;  %1904 = vmatmul.bf16.vlgmr.msrb.gmra.mxu3 %v4878_v6  ;;  %v3286_v30 = vor.u32 %v4305_v19, %v3283_v20  ;;  %v3862_v37 = vor.u32 %v4449_v28, %v3859_v29  ;;  %v3385_v14 = vld [vmem:[%s6644_s1 + $0x428] sm:$0xf]  ;;  %v4333_v15 = vld [vmem:[%s6644_s1 + $0x43c] sm:$0xf0]  ;;  %v3194_v19 = vor.u32 %v4285_v13, %v3193_v11  ;;  %v2977_v21 = vld [vmem:[%s6644_s1 + $0xf8] sm:$0xf] }
  0x47   :  { %1952 = vmatpush.bf16.msra.mxu3 %v3982_v34  ;;  %v3259_v34 = vld [vmem:[%s6644_s1 + $0x348] sm:$0xf0]  ;;  %v3386_v20 = vor.u32 %v4333_v15, %v3385_v14  ;;  %v3169_v25 = vld [vmem:[%s6644_s1 + $0x278] sm:$0xf]  ;;  %v4279_v27 = vld [vmem:[%s6644_s1 + $0x28c] sm:$0xf0] }
  0x48   :  { %1911 = vmatpush.bf16.msra.mxu0 %v3382_v42  ;;  %v4443_v42 = vld [vmem:[%s6644_s1 + $0x7b4] sm:$0xf]  ;;  %v3361_v28 = vld [vmem:[%s6644_s1 + $0x3f8] sm:$0xf]  ;;  %v4327_v29 = vld [vmem:[%s6644_s1 + $0x40c] sm:$0xf0] }
  0x49   :  { %1925 = vmatpush.bf16.msra.mxu1 %v3574_v43  ;;  %v3835_v43 = vld [vmem:[%s6644_s1 + $0x7c8] sm:$0xf0]  ;;  %v2953_v36 = vld [vmem:[%s6644_s1 + $0xc8] sm:$0xf]  ;;  %v4369_v45 = vld [vmem:[%s6644_s1 + $0x55c] sm:$0xf0] }
  0x4a   :  { %1939 = vmatpush.bf16.msra.mxu2 %v3766_v44  ;;  %v3262_v44 = vor.u32 %v4299_v33, %v3259_v34  ;;  %v3838_v52 = vor.u32 %v4443_v42, %v3835_v43  ;;  %v3170_v33 = vor.u32 %v4279_v27, %v3169_v25  ;;  %v3362_v34 = vor.u32 %v4327_v29, %v3361_v28  ;;  %v3145_v38 = vld [vmem:[%s6644_s1 + $0x248] sm:$0xf]  ;;  %v4321_v43 = vld [vmem:[%s6644_s1 + $0x3dc] sm:$0xf0]  ;;  %v2929_v49 = vld [vmem:[%s6644_s1 + $0x98] sm:$0xf] }
  0x4b   :  { %1953 = vmatpush.bf16.msra.mxu3 %v3958_v48  ;;  %v3646_v48 = vor.u32 %v4395_v40, %v3643_v41  ;;  %v4273_v41 = vld [vmem:[%s6644_s1 + $0x25c] sm:$0xf0]  ;;  %v3337_v42 = vld [vmem:[%s6644_s1 + $0x3c8] sm:$0xf]  ;;  %v4219_v50 = vld [vmem:[%s6644_s1 + $0xac] sm:$0xf0] }
  0x4c   :  { %1912 = vmatpush.bf16.msra.mxu0 %v3358_v54  ;;  %v4437_v54 = vld [vmem:[%s6644_s1 + $0x784] sm:$0xf]  ;;  %v3121_v51 = vld [vmem:[%s6644_s1 + $0x218] sm:$0xf]  ;;  %v4267_v53 = vld [vmem:[%s6644_s1 + $0x22c] sm:$0xf0] }
  0x4d   :  { %1926 = vmatpush.bf16.msra.mxu1 %v3550_v55  ;;  %v3811_v55 = vld [vmem:[%s6644_s1 + $0x798] sm:$0xf0]  ;;  %v2905_v62 = vld [vmem:[%s6644_s1 + $0x68] sm:$0xf]  ;;  %v4213_v63 = vld [vmem:[%s6644_s1 + $0x7c] sm:$0xf0] }
  0x4e   :  { %1940 = vmatpush.bf16.msra.mxu2 %v3742_v56  ;;  %v3025_v56 = vld [vmem:[%s6644_s1 + $0x158] sm:$0xf]  ;;  %v4255_v15 = vld [vmem:[%s6644_s1 + $0x1cc] sm:$0xf0]  ;;  %v3049_v27 = vld [vmem:[%s6644_s1 + $0x188] sm:$0xf] }
  0x4f   :  { %1954 = vmatpush.bf16.msra.mxu3 %v3934_v61  ;;  %v4291_v61 = vld [vmem:[%s6644_s1 + $0x2ec] sm:$0xf0]  ;;  %v2881_v11 = vld [vmem:[%s6644_s1 + $0x38] sm:$0xf]  ;;  %v4249_v28 = vld [vmem:[%s6644_s1 + $0x19c] sm:$0xf0] }
  0x50   :  { %1913 = vmatpush.bf16.msra.mxu0 %v3334_v3  ;;  %v4387_v3 = vld [vmem:[%s6644_s1 + $0x5ec] sm:$0xf0]  ;;  %v3218_v7 = vor.u32 %v4291_v61, %v3217_v59  ;;  %v2930_v59 = vor.u32 %v4219_v50, %v2929_v49  ;;  %v3073_v13 = vld [vmem:[%s6644_s1 + $0x1b8] sm:$0xf]  ;;  %v3241_v29 = vld [vmem:[%s6644_s1 + $0x308] sm:$0xf] }
  0x51   :  { %1927 = vmatpush.bf16.msra.mxu1 %v3526_v4  ;;  %v3814_v4 = vor.u32 %v4437_v54, %v3811_v55  ;;  %v3602_v12 = vor.u32 %v4387_v3, %v3601_v2  ;;  %v3313_v54 = vld [vmem:[%s6644_s1 + $0x398] sm:$0xf]  ;;  %v4315_v55 = vld [vmem:[%s6644_s1 + $0x3ac] sm:$0xf0]  ;;  %v4261_v2 = vld [vmem:[%s6644_s1 + $0x1fc] sm:$0xf0]  ;;  %v3074_v25 = vor.u32 %v4255_v15, %v3073_v13 }
  0x52   :  { %1941 = vmatpush.bf16.msra.mxu2 %v3718_v5  ;;  %v3026_v5 = vor.u32 %v4243_v58, %v3025_v56  ;;  %v3505_v56 = vld [vmem:[%s6644_s1 + $0x518] sm:$0xf]  ;;  %v4363_v58 = vld [vmem:[%s6644_s1 + $0x52c] sm:$0xf0]  ;;  %v3314_v61 = vor.u32 %v4315_v55, %v3313_v54  ;;  %v3289_v3 = vld [vmem:[%s6644_s1 + $0x368] sm:$0xf] }
  0x53   :  { %1955 = vmatpush.bf16.msra.mxu3 %v3910_v10  ;;  %v4237_v10 = vld [vmem:[%s6644_s1 + $0x13c] sm:$0xf0]  ;;  %v3721_v13 = vld [vmem:[%s6644_s1 + $0x6c8] sm:$0xf] }
  0x54   :  { %1914 = vmatpush.bf16.msra.mxu0 %v3310_v16  ;;  %v3577_v16 = vld [vmem:[%s6644_s1 + $0x5a8] sm:$0xf]  ;;  %v4477_v55 = vld [vmem:[%s6644_s1 + $0x8bc] sm:$0xf0] }
  0x55   :  { %1928 = vmatpush.bf16.msra.mxu1 %v3502_v17  ;;  %v4381_v17 = vld [vmem:[%s6644_s1 + $0x5bc] sm:$0xf0]  ;;  %v3913_v15 = vld [vmem:[%s6644_s1 + $0x848] sm:$0xf] }
  0x56   :  { %1942 = vmatpush.bf16.msra.mxu2 %v3694_v18  ;;  %v3002_v18 = vor.u32 %v4237_v10, %v3001_v9  ;;  %v3578_v26 = vor.u32 %v4381_v17, %v3577_v16  ;;  %v3265_v16 = vld [vmem:[%s6644_s1 + $0x338] sm:$0xf]  ;;  %v4303_v17 = vld [vmem:[%s6644_s1 + $0x34c] sm:$0xf0] }
  0x57   :  { %1956 = vmatpush.bf16.msra.mxu3 %v3886_v24  ;;  %v4231_v24 = vld [vmem:[%s6644_s1 + $0x10c] sm:$0xf0] }
  0x58   :  { %1915 = vmatpush.bf16.msra.mxu0 %v3286_v30  ;;  %v3553_v30 = vld [vmem:[%s6644_s1 + $0x578] sm:$0xf] }
  0x59   :  { %1929 = vmatpush.bf16.msra.mxu1 %v3478_v31  ;;  %v4375_v31 = vld [vmem:[%s6644_s1 + $0x58c] sm:$0xf0] }
  0x5a   :  { %1943 = vmatpush.bf16.msra.mxu2 %v3670_v32  ;;  %v2978_v32 = vor.u32 %v4231_v24, %v2977_v21  ;;  %v3554_v40 = vor.u32 %v4375_v31, %v3553_v30  ;;  %v2857_v21 = vld [vmem:[%s6644_s1 + $0x8] sm:$0xf]  ;;  %v4201_v24 = vld [vmem:[%s6644_s1 + $0x1c] sm:$0xf0] }
  0x5b   :  { %1957 = vmatpush.bf16.msra.mxu3 %v3862_v37  ;;  %v4225_v37 = vld [vmem:[%s6644_s1 + $0xdc] sm:$0xf0] }
  0x5c   :  { %1916 = vmatpush.bf16.msra.mxu0 %v3262_v44  ;;  %v3529_v44 = vld [vmem:[%s6644_s1 + $0x548] sm:$0xf]  ;;  %v2954_v46 = vor.u32 %v4225_v37, %v2953_v36  ;;  %v4297_v31 = vld [vmem:[%s6644_s1 + $0x31c] sm:$0xf0]  ;;  %v4435_v36 = vld [vmem:[%s6644_s1 + $0x76c] sm:$0xf0] }
  0x5d   :  { %1930 = vmatpush.bf16.msra.mxu1 %v3454_v47  ;;  %v3146_v47 = vor.u32 %v4273_v41, %v3145_v38  ;;  %v3985_v37 = vld [vmem:[%s6644_s1 + $0x8d8] sm:$0xf]  ;;  %v2858_v38 = vor.u32 %v4201_v24, %v2857_v21  ;;  %v4240_v41 = vld [vmem:[%s6644_s1 + $0x15c] sm:$0xf]  ;;  %v3147_v21 = vld [vmem:[%s6644_s1 + $0x260] sm:$0xf0] }
  0x5e   :  { %1944 = vmatpush.bf16.msra.mxu2 %v3646_v48  ;;  %v3338_v48 = vor.u32 %v4321_v43, %v3337_v42  ;;  %v3027_v42 = vld [vmem:[%s6644_s1 + $0x170] sm:$0xf0]  ;;  %v3050_v43 = vor.u32 %v4249_v28, %v3049_v27  ;;  %v3697_v27 = vld [vmem:[%s6644_s1 + $0x698] sm:$0xf]  ;;  %v4411_v28 = vld [vmem:[%s6644_s1 + $0x6ac] sm:$0xf0] }
  0x5f   :  { %1958 = vmatpush.bf16.msra.mxu3 %v3838_v52  ;;  %v3530_v52 = vor.u32 %v4369_v45, %v3529_v44  ;;  %v3242_v44 = vor.u32 %v4297_v31, %v3241_v29  ;;  %v4288_v45 = vld [vmem:[%s6644_s1 + $0x2dc] sm:$0xf]  ;;  %v3030_v50 = vor.u32 %v4240_v41, %v3027_v42  ;;  %v3889_v29 = vld [vmem:[%s6644_s1 + $0x818] sm:$0xf]  ;;  %v4459_v31 = vld [vmem:[%s6644_s1 + $0x82c] sm:$0xf0] }
  0x60   :  { %1917 = vmatpush.bf16.msra.mxu0 %v3238_v60  ;;  %v3122_v60 = vor.u32 %v4267_v53, %v3121_v51  ;;  %v3769_v51 = vld [vmem:[%s6644_s1 + $0x728] sm:$0xf]  ;;  %v4405_v42 = vld [vmem:[%s6644_s1 + $0x67c] sm:$0xf0] }
  0x61   :  { %1931 = vmatpush.bf16.msra.mxu1 %v3430_v0  ;;  %v3097_v0 = vld [vmem:[%s6644_s1 + $0x1e8] sm:$0xf] }
  0x62   :  { %1945 = vmatpush.bf16.msra.mxu2 %v3622_v1  ;;  %v3506_v1 = vor.u32 %v4363_v58, %v3505_v56  ;;  %v3098_v9 = vor.u32 %v4261_v2, %v3097_v0  ;;  %v3961_v53 = vld [vmem:[%s6644_s1 + $0x8a8] sm:$0xf]  ;;  %v4234_v56 = vld [vmem:[%s6644_s1 + $0x12c] sm:$0xf]  ;;  %v3003_v58 = vld [vmem:[%s6644_s1 + $0x140] sm:$0xf0] }
  0x63   :  { %1959 = vmatpush.bf16.msra.mxu3 %v3814_v4  ;;  %1918 = vmatmul.bf16.vlgmr.msra.gmra.mxu0 %v4914_v22  ;;  %v4309_v4 = vld [vmem:[%s6644_s1 + $0x37c] sm:$0xf0]  ;;  %v3745_v0 = vld [vmem:[%s6644_s1 + $0x6f8] sm:$0xf]  ;;  %v3673_v41 = vld [vmem:[%s6644_s1 + $0x668] sm:$0xf] }
  0x64   :  { %1966 = vmatpush.bf16.msrb.mxu0 %v3026_v5  ;;  %1932 = vmatmul.bf16.vlgmr.msra.gmra.mxu1 %v4916_v23  ;;  %v3481_v5 = vld [vmem:[%s6644_s1 + $0x4e8] sm:$0xf]  ;;  %v3290_v10 = vor.u32 %v4309_v4, %v3289_v3  ;;  %v3937_v2 = vld [vmem:[%s6644_s1 + $0x878] sm:$0xf]  ;;  %v4471_v4 = vld [vmem:[%s6644_s1 + $0x88c] sm:$0xf0] }
  0x65   :  { %1980 = vmatpush.bf16.msrb.mxu1 %v3218_v7  ;;  %1946 = vmatmul.bf16.vlgmr.msra.gmra.mxu2 %v5061_v35  ;;  %v4357_v7 = vld [vmem:[%s6644_s1 + $0x4fc] sm:$0xf0] }
  0x66   :  { %1994 = vmatpush.bf16.msrb.mxu2 %v3410_v8  ;;  %1960 = vmatmul.bf16.vlgmr.msra.gmra.mxu3 %v5072_v39  ;;  %v2906_v8 = vor.u32 %v4213_v63, %v2905_v62  ;;  %v3482_v14 = vor.u32 %v4357_v7, %v3481_v5  ;;  %v3962_v62 = vor.u32 %v4477_v55, %v3961_v53  ;;  %v4228_v5 = vld [vmem:[%s6644_s1 + $0xfc] sm:$0xf]  ;;  %v2979_v7 = vld [vmem:[%s6644_s1 + $0x110] sm:$0xf0]  ;;  %v3649_v53 = vld [vmem:[%s6644_s1 + $0x638] sm:$0xf] }
  0x67   :  { %2008 = vmatpush.bf16.msrb.mxu3 %v3602_v12  ;;  %v4207_v12 = vld [vmem:[%s6644_s1 + $0x4c] sm:$0xf0]  ;;  %v3006_v63 = vor.u32 %v4234_v56, %v3003_v58  ;;  %v3841_v55 = vld [vmem:[%s6644_s1 + $0x7b8] sm:$0xf] }
  0x68   :  { %1967 = vmatpush.bf16.msrb.mxu0 %v3002_v18  ;;  %v3457_v18 = vld [vmem:[%s6644_s1 + $0x4b8] sm:$0xf]  ;;  %v4447_v58 = vld [vmem:[%s6644_s1 + $0x7cc] sm:$0xf0] }
  0x69   :  { %1981 = vmatpush.bf16.msrb.mxu1 %v3194_v19  ;;  %v4351_v19 = vld [vmem:[%s6644_s1 + $0x4cc] sm:$0xf0] }
  0x6a   :  { %1995 = vmatpush.bf16.msrb.mxu2 %v3386_v20  ;;  %v2882_v20 = vor.u32 %v4207_v12, %v2881_v11  ;;  %v3458_v30 = vor.u32 %v4351_v19, %v3457_v18  ;;  %v3938_v11 = vor.u32 %v4471_v4, %v3937_v2  ;;  %v2982_v12 = vor.u32 %v4228_v5, %v2979_v7  ;;  %v4222_v18 = vld [vmem:[%s6644_s1 + $0xcc] sm:$0xf]  ;;  %v2955_v19 = vld [vmem:[%s6644_s1 + $0xe0] sm:$0xf0]  ;;  %v3817_v4 = vld [vmem:[%s6644_s1 + $0x788] sm:$0xf] }
  0x6b   :  { %2009 = vmatpush.bf16.msrb.mxu3 %v3578_v26  ;;  %v3266_v26 = vor.u32 %v4303_v17, %v3265_v16  ;;  %v4465_v17 = vld [vmem:[%s6644_s1 + $0x85c] sm:$0xf0]  ;;  %v3842_v2 = vor.u32 %v4447_v58, %v3841_v55  ;;  %v4198_v7 = vld [vmem:[%s6644_s1 + $0xc] sm:$0xf] }
  0x6c   :  { %1968 = vmatpush.bf16.msrb.mxu0 %v2978_v32  ;;  %v3433_v32 = vld [vmem:[%s6644_s1 + $0x488] sm:$0xf]  ;;  %v4441_v5 = vld [vmem:[%s6644_s1 + $0x79c] sm:$0xf0]  ;;  %v4318_v55 = vld [vmem:[%s6644_s1 + $0x3cc] sm:$0xf] }
  0x6d   :  { %1982 = vmatpush.bf16.msrb.mxu1 %v3170_v33  ;;  %v4345_v33 = vld [vmem:[%s6644_s1 + $0x49c] sm:$0xf0]  ;;  %v4366_v58 = vld [vmem:[%s6644_s1 + $0x54c] sm:$0xf] }
  0x6e   :  { %1996 = vmatpush.bf16.msrb.mxu2 %v3362_v34  ;;  %v3793_v34 = vld [vmem:[%s6644_s1 + $0x758] sm:$0xf] }
  0x6f   :  { %2010 = vmatpush.bf16.msrb.mxu3 %v3554_v40  ;;  %v4483_v40 = vld [vmem:[%s6644_s1 + $0x8ec] sm:$0xf0] }
  0x70   :  { %1969 = vmatpush.bf16.msrb.mxu0 %v2954_v46  ;;  %v3219_v46 = vld [vmem:[%s6644_s1 + $0x2f0] sm:$0xf0]  ;;  %v3986_v49 = vor.u32 %v4483_v40, %v3985_v37  ;;  %v3698_v37 = vor.u32 %v4411_v28, %v3697_v27 }
  0x71   :  { %1983 = vmatpush.bf16.msrb.mxu1 %v3146_v47  ;;  %v3434_v47 = vor.u32 %v4345_v33, %v3433_v32  ;;  %v3222_v54 = vor.u32 %v4288_v45, %v3219_v46  ;;  %v4216_v32 = vld [vmem:[%s6644_s1 + $0x9c] sm:$0xf]  ;;  %v2931_v33 = vld [vmem:[%s6644_s1 + $0xb0] sm:$0xf0]  ;;  %v4453_v45 = vld [vmem:[%s6644_s1 + $0x7fc] sm:$0xf0] }
  0x72   :  { %1997 = vmatpush.bf16.msrb.mxu2 %v3338_v48  ;;  %v3794_v48 = vor.u32 %v4435_v36, %v3793_v34  ;;  %v4264_v34 = vld [vmem:[%s6644_s1 + $0x21c] sm:$0xf]  ;;  %v3123_v36 = vld [vmem:[%s6644_s1 + $0x230] sm:$0xf0]  ;;  %v2934_v40 = vor.u32 %v4216_v32, %v2931_v33  ;;  %v4210_v46 = vld [vmem:[%s6644_s1 + $0x6c] sm:$0xf] }
  0x73   :  { %2011 = vmatpush.bf16.msrb.mxu3 %v3530_v52  ;;  %v4429_v52 = vld [vmem:[%s6644_s1 + $0x73c] sm:$0xf0]  ;;  %v3579_v33 = vld [vmem:[%s6644_s1 + $0x5c0] sm:$0xf0] }
  0x74   :  { %1970 = vmatpush.bf16.msrb.mxu0 %v2930_v59  ;;  %v4282_v59 = vld [vmem:[%s6644_s1 + $0x2ac] sm:$0xf] }
  0x75   :  { %1984 = vmatpush.bf16.msrb.mxu1 %v3122_v60  ;;  %v3195_v60 = vld [vmem:[%s6644_s1 + $0x2c0] sm:$0xf0] }
  0x76   :  { %1998 = vmatpush.bf16.msrb.mxu2 %v3314_v61  ;;  %v3770_v61 = vor.u32 %v4429_v52, %v3769_v51  ;;  %v3198_v3 = vor.u32 %v4282_v59, %v3195_v60  ;;  %v4204_v59 = vld [vmem:[%s6644_s1 + $0x3c] sm:$0xf]  ;;  %v2883_v60 = vld [vmem:[%s6644_s1 + $0x50] sm:$0xf0] }
  0x77   :  { %2012 = vmatpush.bf16.msrb.mxu3 %v3506_v1  ;;  %v4423_v1 = vld [vmem:[%s6644_s1 + $0x70c] sm:$0xf0] }
  0x78   :  { %1971 = vmatpush.bf16.msrb.mxu0 %v2906_v8  ;;  %v4276_v8 = vld [vmem:[%s6644_s1 + $0x27c] sm:$0xf] }
  0x79   :  { %1985 = vmatpush.bf16.msrb.mxu1 %v3098_v9  ;;  %v3171_v9 = vld [vmem:[%s6644_s1 + $0x290] sm:$0xf0] }
  0x7a   :  { %1999 = vmatpush.bf16.msrb.mxu2 %v3290_v10  ;;  %v3746_v10 = vor.u32 %v4423_v1, %v3745_v0  ;;  %v3174_v16 = vor.u32 %v4276_v8, %v3171_v9  ;;  %v3625_v0 = vld [vmem:[%s6644_s1 + $0x608] sm:$0xf]  ;;  %v4393_v1 = vld [vmem:[%s6644_s1 + $0x61c] sm:$0xf0]  ;;  %v2859_v9 = vld [vmem:[%s6644_s1 + $0x20] sm:$0xf0] }
  0x7b   :  { %2013 = vmatpush.bf16.msrb.mxu3 %v3482_v14  ;;  %v4417_v14 = vld [vmem:[%s6644_s1 + $0x6dc] sm:$0xf0] }
  0x7c   :  { %1972 = vmatpush.bf16.msrb.mxu0 %v2882_v20  ;;  %v4270_v20 = vld [vmem:[%s6644_s1 + $0x24c] sm:$0xf]  ;;  %v3722_v24 = vor.u32 %v4417_v14, %v3721_v13  ;;  %v3411_v13 = vld [vmem:[%s6644_s1 + $0x470] sm:$0xf0]  ;;  %v4384_v14 = vld [vmem:[%s6644_s1 + $0x5dc] sm:$0xf] }
  0x7d   :  { %1986 = vmatpush.bf16.msrb.mxu1 %v3074_v25  ;;  %v3914_v25 = vor.u32 %v4465_v17, %v3913_v15  ;;  %v3626_v15 = vor.u32 %v4393_v1, %v3625_v0  ;;  %v4432_v17 = vld [vmem:[%s6644_s1 + $0x75c] sm:$0xf]  ;;  %v3915_v0 = vld [vmem:[%s6644_s1 + $0x860] sm:$0xf0] }
  0x7e   :  { %2000 = vmatpush.bf16.msrb.mxu2 %v3266_v26  ;;  %v2958_v26 = vor.u32 %v4222_v18, %v2955_v19  ;;  %v3795_v18 = vld [vmem:[%s6644_s1 + $0x770] sm:$0xf0]  ;;  %v3818_v19 = vor.u32 %v4441_v5, %v3817_v4  ;;  %v4312_v4 = vld [vmem:[%s6644_s1 + $0x39c] sm:$0xf] }
  0x7f   :  { %2014 = vmatpush.bf16.msrb.mxu3 %v3458_v30  ;;  %v3150_v30 = vor.u32 %v4270_v20, %v3147_v21  ;;  %v2862_v20 = vor.u32 %v4198_v7, %v2859_v9  ;;  %v4480_v21 = vld [vmem:[%s6644_s1 + $0x8dc] sm:$0xf]  ;;  %v3798_v28 = vor.u32 %v4432_v17, %v3795_v18  ;;  %v3315_v5 = vld [vmem:[%s6644_s1 + $0x3b0] sm:$0xf0]  ;;  %v4306_v17 = vld [vmem:[%s6644_s1 + $0x36c] sm:$0xf] }
  0x80   :  { %1973 = vmatpush.bf16.msrb.mxu0 %v2858_v38  ;;  %v3890_v38 = vor.u32 %v4459_v31, %v3889_v29  ;;  %v4330_v29 = vld [vmem:[%s6644_s1 + $0x42c] sm:$0xf]  ;;  %v4360_v7 = vld [vmem:[%s6644_s1 + $0x51c] sm:$0xf]  ;;  %v3507_v9 = vld [vmem:[%s6644_s1 + $0x530] sm:$0xf0] }
  0x81   :  { %1987 = vmatpush.bf16.msrb.mxu1 %v3050_v43  ;;  %v3865_v43 = vld [vmem:[%s6644_s1 + $0x7e8] sm:$0xf]  ;;  %v4378_v31 = vld [vmem:[%s6644_s1 + $0x5ac] sm:$0xf]  ;;  %v3291_v18 = vld [vmem:[%s6644_s1 + $0x380] sm:$0xf0] }
  0x82   :  { %2001 = vmatpush.bf16.msrb.mxu2 %v3242_v44  ;;  %v3126_v44 = vor.u32 %v4264_v34, %v3123_v36  ;;  %v3866_v51 = vor.u32 %v4453_v45, %v3865_v43  ;;  %v4426_v34 = vld [vmem:[%s6644_s1 + $0x72c] sm:$0xf]  ;;  %v3771_v36 = vld [vmem:[%s6644_s1 + $0x740] sm:$0xf0]  ;;  %v4324_v43 = vld [vmem:[%s6644_s1 + $0x3fc] sm:$0xf] }
  0x83   :  { %2015 = vmatpush.bf16.msrb.mxu3 %v3434_v47  ;;  %1974 = vmatmul.bf16.vlgmr.msrb.gmra.mxu0 %v4848_v57  ;;  %v2907_v47 = vld [vmem:[%s6644_s1 + $0x80] sm:$0xf0]  ;;  %v4372_v45 = vld [vmem:[%s6644_s1 + $0x57c] sm:$0xf] }
  0x84   :  { %2022 = vmatpush.bf16.msra.mxu0 %v3794_v48  ;;  %1988 = vmatmul.bf16.vlgmr.msrb.gmra.mxu1 %v4878_v6  ;;  %v4258_v48 = vld [vmem:[%s6644_s1 + $0x1ec] sm:$0xf]  ;;  %v2910_v52 = vor.u32 %v4210_v46, %v2907_v47  ;;  %v3555_v47 = vld [vmem:[%s6644_s1 + $0x590] sm:$0xf0] }
  0x85   :  { %2036 = vmatpush.bf16.msra.mxu1 %v3986_v49  ;;  %2002 = vmatmul.bf16.vlgmr.msrb.gmra.mxu2 %v4914_v22  ;;  %v3099_v49 = vld [vmem:[%s6644_s1 + $0x200] sm:$0xf0] }
  0x86   :  { %2050 = vmatpush.bf16.msra.mxu2 %v3030_v50  ;;  %2016 = vmatmul.bf16.vlgmr.msrb.gmra.mxu3 %v4916_v23  ;;  %v3674_v50 = vor.u32 %v4405_v42, %v3673_v41  ;;  %v3102_v56 = vor.u32 %v4258_v48, %v3099_v49  ;;  %v3582_v41 = vor.u32 %v4378_v31, %v3579_v33  ;;  %v4420_v48 = vld [vmem:[%s6644_s1 + $0x6fc] sm:$0xf]  ;;  %v3747_v49 = vld [vmem:[%s6644_s1 + $0x710] sm:$0xf0] }
  0x87   :  { %2064 = vmatpush.bf16.msra.mxu3 %v3222_v54  ;;  %v4399_v54 = vld [vmem:[%s6644_s1 + $0x64c] sm:$0xf0]  ;;  %v3774_v42 = vor.u32 %v4426_v34, %v3771_v36  ;;  %v4300_v31 = vld [vmem:[%s6644_s1 + $0x33c] sm:$0xf]  ;;  %v3459_v36 = vld [vmem:[%s6644_s1 + $0x4d0] sm:$0xf0] }
  0x88   :  { %2023 = vmatpush.bf16.msra.mxu0 %v3770_v61  ;;  %v4252_v61 = vld [vmem:[%s6644_s1 + $0x1bc] sm:$0xf] }
  0x89   :  { %2037 = vmatpush.bf16.msra.mxu1 %v3962_v62  ;;  %v3075_v62 = vld [vmem:[%s6644_s1 + $0x1d0] sm:$0xf0]  ;;  %v4348_v33 = vld [vmem:[%s6644_s1 + $0x4bc] sm:$0xf] }
  0x8a   :  { %2051 = vmatpush.bf16.msra.mxu2 %v3006_v63  ;;  %v3650_v63 = vor.u32 %v4399_v54, %v3649_v53  ;;  %v3078_v8 = vor.u32 %v4252_v61, %v3075_v62  ;;  %v3558_v53 = vor.u32 %v4372_v45, %v3555_v47  ;;  %v3750_v54 = vor.u32 %v4420_v48, %v3747_v49  ;;  %v4414_v61 = vld [vmem:[%s6644_s1 + $0x6cc] sm:$0xf]  ;;  %v3723_v62 = vld [vmem:[%s6644_s1 + $0x6e0] sm:$0xf0] }
  0x8b   :  { %2065 = vmatpush.bf16.msra.mxu3 %v3198_v3  ;;  %v2886_v3 = vor.u32 %v4204_v59, %v2883_v60  ;;  %v3531_v60 = vld [vmem:[%s6644_s1 + $0x560] sm:$0xf0]  ;;  %v3462_v45 = vor.u32 %v4348_v33, %v3459_v36  ;;  %v4342_v47 = vld [vmem:[%s6644_s1 + $0x48c] sm:$0xf]  ;;  %v2961_v33 = vld [vmem:[%s6644_s1 + $0xd0] sm:$0xf] }
  0x8c   :  { %2024 = vmatpush.bf16.msra.mxu0 %v3746_v10  ;;  %v4246_v10 = vld [vmem:[%s6644_s1 + $0x18c] sm:$0xf]  ;;  %v3435_v48 = vld [vmem:[%s6644_s1 + $0x4a0] sm:$0xf0]  ;;  %v3153_v36 = vld [vmem:[%s6644_s1 + $0x250] sm:$0xf] }
  0x8d   :  { %2038 = vmatpush.bf16.msra.mxu1 %v3938_v11  ;;  %v3051_v11 = vld [vmem:[%s6644_s1 + $0x1a0] sm:$0xf0]  ;;  %v4390_v49 = vld [vmem:[%s6644_s1 + $0x60c] sm:$0xf] }
  0x8e   :  { %2052 = vmatpush.bf16.msra.mxu2 %v2982_v12  ;;  %v4336_v12 = vld [vmem:[%s6644_s1 + $0x45c] sm:$0xf] }
  0x8f   :  { %2066 = vmatpush.bf16.msra.mxu3 %v3174_v16  ;;  %v3603_v16 = vld [vmem:[%s6644_s1 + $0x5f0] sm:$0xf0] }
  0x90   :  { %2025 = vmatpush.bf16.msra.mxu0 %v3722_v24  ;;  %v3987_v24 = vld [vmem:[%s6644_s1 + $0x8f0] sm:$0xf0]  ;;  %v3606_v27 = vor.u32 %v4384_v14, %v3603_v16  ;;  %v3318_v14 = vor.u32 %v4312_v4, %v3315_v5 }
  0x91   :  { %2039 = vmatpush.bf16.msra.mxu1 %v3914_v25  ;;  %v3054_v25 = vor.u32 %v4246_v10, %v3051_v11  ;;  %v3990_v32 = vor.u32 %v4480_v21, %v3987_v24  ;;  %v4408_v10 = vld [vmem:[%s6644_s1 + $0x69c] sm:$0xf]  ;;  %v3699_v11 = vld [vmem:[%s6644_s1 + $0x6b0] sm:$0xf0]  ;;  %v3483_v21 = vld [vmem:[%s6644_s1 + $0x500] sm:$0xf0] }
  0x92   :  { %2053 = vmatpush.bf16.msra.mxu2 %v2958_v26  ;;  %v3414_v26 = vor.u32 %v4336_v12, %v3411_v13  ;;  %v4456_v12 = vld [vmem:[%s6644_s1 + $0x81c] sm:$0xf]  ;;  %v3891_v13 = vld [vmem:[%s6644_s1 + $0x830] sm:$0xf0]  ;;  %v3702_v16 = vor.u32 %v4408_v10, %v3699_v11  ;;  %v4402_v24 = vld [vmem:[%s6644_s1 + $0x66c] sm:$0xf] }
  0x93   :  { %2067 = vmatpush.bf16.msra.mxu3 %v3150_v30  ;;  %v3387_v30 = vld [vmem:[%s6644_s1 + $0x440] sm:$0xf0]  ;;  %v4286_v11 = vld [vmem:[%s6644_s1 + $0x2c4] sm:$0xf0] }
  0x94   :  { %2026 = vmatpush.bf16.msra.mxu0 %v3698_v37  ;;  %v4474_v37 = vld [vmem:[%s6644_s1 + $0x8ac] sm:$0xf] }
  0x95   :  { %2040 = vmatpush.bf16.msra.mxu1 %v3890_v38  ;;  %v3963_v38 = vld [vmem:[%s6644_s1 + $0x8c0] sm:$0xf0] }
  0x96   :  { %2054 = vmatpush.bf16.msra.mxu2 %v2934_v40  ;;  %v3390_v40 = vor.u32 %v4330_v29, %v3387_v30  ;;  %v3966_v46 = vor.u32 %v4474_v37, %v3963_v38  ;;  %v4396_v37 = vld [vmem:[%s6644_s1 + $0x63c] sm:$0xf]  ;;  %v3651_v38 = vld [vmem:[%s6644_s1 + $0x650] sm:$0xf0] }
  0x97   :  { %2068 = vmatpush.bf16.msra.mxu3 %v3126_v44  ;;  %v3363_v44 = vld [vmem:[%s6644_s1 + $0x410] sm:$0xf0] }
  0x98   :  { %2027 = vmatpush.bf16.msra.mxu0 %v3674_v50  ;;  %v4468_v50 = vld [vmem:[%s6644_s1 + $0x87c] sm:$0xf] }
  0x99   :  { %2041 = vmatpush.bf16.msra.mxu1 %v3866_v51  ;;  %v3939_v51 = vld [vmem:[%s6644_s1 + $0x890] sm:$0xf0] }
  0x9a   :  { %2055 = vmatpush.bf16.msra.mxu2 %v2910_v52  ;;  %v3366_v52 = vor.u32 %v4324_v43, %v3363_v44  ;;  %v3942_v59 = vor.u32 %v4468_v50, %v3939_v51  ;;  %v4294_v43 = vld [vmem:[%s6644_s1 + $0x30c] sm:$0xf]  ;;  %v3243_v44 = vld [vmem:[%s6644_s1 + $0x320] sm:$0xf0] }
  0x9b   :  { %2069 = vmatpush.bf16.msra.mxu3 %v3102_v56  ;;  %v3339_v56 = vld [vmem:[%s6644_s1 + $0x3e0] sm:$0xf0] }
  0x9c   :  { %2028 = vmatpush.bf16.msra.mxu0 %v3650_v63  ;;  %v4462_v63 = vld [vmem:[%s6644_s1 + $0x84c] sm:$0xf]  ;;  %v3342_v1 = vor.u32 %v4318_v55, %v3339_v56  ;;  %v3627_v51 = vld [vmem:[%s6644_s1 + $0x620] sm:$0xf0]  ;;  %v4244_v55 = vld [vmem:[%s6644_s1 + $0x174] sm:$0xf0] }
  0x9d   :  { %2042 = vmatpush.bf16.msra.mxu1 %v3842_v2  ;;  %v3534_v2 = vor.u32 %v4366_v58, %v3531_v60  ;;  %v3225_v56 = vld [vmem:[%s6644_s1 + $0x2e0] sm:$0xf]  ;;  %v3246_v58 = vor.u32 %v4294_v43, %v3243_v44  ;;  %v4370_v43 = vld [vmem:[%s6644_s1 + $0x564] sm:$0xf0] }
  0x9e   :  { %2056 = vmatpush.bf16.msra.mxu2 %v2886_v3  ;;  %v3726_v3 = vor.u32 %v4414_v61, %v3723_v62  ;;  %v3417_v60 = vld [vmem:[%s6644_s1 + $0x460] sm:$0xf]  ;;  %v4340_v61 = vld [vmem:[%s6644_s1 + $0x474] sm:$0xf0]  ;;  %v3438_v62 = vor.u32 %v4342_v47, %v3435_v48 }
  0x9f   :  { %2070 = vmatpush.bf16.msra.mxu3 %v3078_v8  ;;  %v3918_v8 = vor.u32 %v4462_v63, %v3915_v0  ;;  %v3630_v63 = vor.u32 %v4390_v49, %v3627_v51  ;;  %v3609_v0 = vld [vmem:[%s6644_s1 + $0x5e0] sm:$0xf]  ;;  %v3418_v5 = vor.u32 %v4340_v61, %v3417_v60  ;;  %v4220_v48 = vld [vmem:[%s6644_s1 + $0xb4] sm:$0xf0]  ;;  %v2913_v60 = vld [vmem:[%s6644_s1 + $0x70] sm:$0xf] }
  0xa0   :  { %2029 = vmatpush.bf16.msra.mxu0 %v3626_v15  ;;  %v3510_v15 = vor.u32 %v4360_v7, %v3507_v9  ;;  %v3009_v7 = vld [vmem:[%s6644_s1 + $0x130] sm:$0xf]  ;;  %v2937_v47 = vld [vmem:[%s6644_s1 + $0xa0] sm:$0xf]  ;;  %v4268_v51 = vld [vmem:[%s6644_s1 + $0x234] sm:$0xf0] }
  0xa1   :  { %2043 = vmatpush.bf16.msra.mxu1 %v3818_v19  ;;  %v4354_v19 = vld [vmem:[%s6644_s1 + $0x4ec] sm:$0xf]  ;;  %v3201_v9 = vld [vmem:[%s6644_s1 + $0x2b0] sm:$0xf]  ;;  %v3129_v49 = vld [vmem:[%s6644_s1 + $0x220] sm:$0xf] }
  0xa2   :  { %2057 = vmatpush.bf16.msra.mxu2 %v2862_v20  ;;  %v3894_v20 = vor.u32 %v4456_v12, %v3891_v13  ;;  %v3486_v29 = vor.u32 %v4354_v19, %v3483_v21  ;;  %v3393_v12 = vld [vmem:[%s6644_s1 + $0x430] sm:$0xf]  ;;  %v4334_v13 = vld [vmem:[%s6644_s1 + $0x444] sm:$0xf0]  ;;  %v2985_v19 = vld [vmem:[%s6644_s1 + $0x100] sm:$0xf] }
  0xa3   :  { %2071 = vmatpush.bf16.msra.mxu3 %v3054_v25  ;;  %2030 = vmatmul.bf16.vlgmr.msra.gmra.mxu0 %v5061_v35  ;;  %v3675_v25 = vld [vmem:[%s6644_s1 + $0x680] sm:$0xf0]  ;;  %v3177_v21 = vld [vmem:[%s6644_s1 + $0x280] sm:$0xf]  ;;  %v4214_v61 = vld [vmem:[%s6644_s1 + $0x84] sm:$0xf0] }
  0xa4   :  { %2078 = vmatpush.bf16.msrb.mxu0 %v3414_v26  ;;  %2044 = vmatmul.bf16.vlgmr.msra.gmra.mxu1 %v5072_v39  ;;  %v4450_v26 = vld [vmem:[%s6644_s1 + $0x7ec] sm:$0xf]  ;;  %v3678_v30 = vor.u32 %v4402_v24, %v3675_v25  ;;  %v4280_v25 = vld [vmem:[%s6644_s1 + $0x294] sm:$0xf0] }
  0xa5   :  { %2092 = vmatpush.bf16.msrb.mxu1 %v3606_v27  ;;  %2058 = vmatmul.bf16.vlgmr.msra.gmra.mxu2 %v4848_v57  ;;  %v3867_v27 = vld [vmem:[%s6644_s1 + $0x800] sm:$0xf0] }
  0xa6   :  { %2106 = vmatpush.bf16.msrb.mxu2 %v3798_v28  ;;  %2072 = vmatmul.bf16.vlgmr.msra.gmra.mxu3 %v4878_v6  ;;  %v3294_v28 = vor.u32 %v4306_v17, %v3291_v18  ;;  %v3870_v34 = vor.u32 %v4450_v26, %v3867_v27  ;;  %v3202_v17 = vor.u32 %v4286_v11, %v3201_v9  ;;  %v3369_v26 = vld [vmem:[%s6644_s1 + $0x400] sm:$0xf]  ;;  %v4328_v27 = vld [vmem:[%s6644_s1 + $0x414] sm:$0xf0] }
  0xa7   :  { %2120 = vmatpush.bf16.msrb.mxu3 %v3990_v32  ;;  %v3267_v32 = vld [vmem:[%s6644_s1 + $0x350] sm:$0xf0]  ;;  %v3394_v18 = vor.u32 %v4334_v13, %v3393_v12  ;;  %v2889_v9 = vld [vmem:[%s6644_s1 + $0x40] sm:$0xf]  ;;  %v4256_v13 = vld [vmem:[%s6644_s1 + $0x1d4] sm:$0xf0] }
  0xa8   :  { %2079 = vmatpush.bf16.msrb.mxu0 %v3390_v40  ;;  %v4444_v40 = vld [vmem:[%s6644_s1 + $0x7bc] sm:$0xf]  ;;  %v3081_v11 = vld [vmem:[%s6644_s1 + $0x1c0] sm:$0xf] }
  0xa9   :  { %2093 = vmatpush.bf16.msrb.mxu1 %v3582_v41  ;;  %v3843_v41 = vld [vmem:[%s6644_s1 + $0x7d0] sm:$0xf0] }
  0xaa   :  { %2107 = vmatpush.bf16.msrb.mxu2 %v3774_v42  ;;  %v3270_v42 = vor.u32 %v4300_v31, %v3267_v32  ;;  %v3846_v50 = vor.u32 %v4444_v40, %v3843_v41  ;;  %v3178_v31 = vor.u32 %v4280_v25, %v3177_v21  ;;  %v3370_v32 = vor.u32 %v4328_v27, %v3369_v26  ;;  %v3345_v40 = vld [vmem:[%s6644_s1 + $0x3d0] sm:$0xf]  ;;  %v4322_v41 = vld [vmem:[%s6644_s1 + $0x3e4] sm:$0xf0]  ;;  %v5994_v21 = vpop.f32.mrf.mxu0 }
  0xab   :  { %2121 = vmatpush.bf16.msrb.mxu3 %v3966_v46  ;;  %v3654_v46 = vor.u32 %v4396_v37, %v3651_v38  ;;  %v4274_v38 = vld [vmem:[%s6644_s1 + $0x264] sm:$0xf0]  ;;  %v3057_v26 = vld [vmem:[%s6644_s1 + $0x190] sm:$0xf] }
  0xac   :  { %2080 = vmatpush.bf16.msrb.mxu0 %v3366_v52  ;;  %v4438_v52 = vld [vmem:[%s6644_s1 + $0x78c] sm:$0xf]  ;;  %v4250_v27 = vld [vmem:[%s6644_s1 + $0x1a4] sm:$0xf0] }
  0xad   :  { %2094 = vmatpush.bf16.msrb.mxu1 %v3558_v53  ;;  %v3819_v53 = vld [vmem:[%s6644_s1 + $0x7a0] sm:$0xf0] }
  0xae   :  { %2108 = vmatpush.bf16.msrb.mxu2 %v3750_v54  ;;  %v3033_v54 = vld [vmem:[%s6644_s1 + $0x160] sm:$0xf] }
  0xaf   :  { %2122 = vmatpush.bf16.msrb.mxu3 %v3942_v59  ;;  %v4292_v59 = vld [vmem:[%s6644_s1 + $0x2f4] sm:$0xf0] }
  0xb0   :  { %2081 = vmatpush.bf16.msrb.mxu0 %v3342_v1  ;;  %v4388_v1 = vld [vmem:[%s6644_s1 + $0x5f4] sm:$0xf0]  ;;  %v3226_v4 = vor.u32 %v4292_v59, %v3225_v56  ;;  %v2938_v56 = vor.u32 %v4220_v48, %v2937_v47 }
  0xb1   :  { %2095 = vmatpush.bf16.msrb.mxu1 %v3534_v2  ;;  %v3822_v2 = vor.u32 %v4438_v52, %v3819_v53  ;;  %v3610_v10 = vor.u32 %v4388_v1, %v3609_v0  ;;  %v3321_v52 = vld [vmem:[%s6644_s1 + $0x3a0] sm:$0xf]  ;;  %v4316_v53 = vld [vmem:[%s6644_s1 + $0x3b4] sm:$0xf0]  ;;  %v4262_v0 = vld [vmem:[%s6644_s1 + $0x204] sm:$0xf0] }
  0xb2   :  { %2109 = vmatpush.bf16.msrb.mxu2 %v3726_v3  ;;  %v3034_v3 = vor.u32 %v4244_v55, %v3033_v54  ;;  %v3513_v54 = vld [vmem:[%s6644_s1 + $0x520] sm:$0xf]  ;;  %v4364_v55 = vld [vmem:[%s6644_s1 + $0x534] sm:$0xf0]  ;;  %v3322_v59 = vor.u32 %v4316_v53, %v3321_v52  ;;  %v3297_v1 = vld [vmem:[%s6644_s1 + $0x370] sm:$0xf] }
  0xb3   :  { %2123 = vmatpush.bf16.msrb.mxu3 %v3918_v8  ;;  %v4238_v8 = vld [vmem:[%s6644_s1 + $0x144] sm:$0xf0]  ;;  %v3969_v53 = vld [vmem:[%s6644_s1 + $0x8b0] sm:$0xf] }
  0xb4   :  { %2082 = vmatpush.bf16.msrb.mxu0 %v3318_v14  ;;  %v3585_v14 = vld [vmem:[%s6644_s1 + $0x5b0] sm:$0xf]  ;;  %v4430_v52 = vld [vmem:[%s6644_s1 + $0x744] sm:$0xf0] }
  0xb5   :  { %2096 = vmatpush.bf16.msrb.mxu1 %v3510_v15  ;;  %v4382_v15 = vld [vmem:[%s6644_s1 + $0x5c4] sm:$0xf0] }
  0xb6   :  { %2110 = vmatpush.bf16.msrb.mxu2 %v3702_v16  ;;  %v3010_v16 = vor.u32 %v4238_v8, %v3009_v7  ;;  %v3586_v24 = vor.u32 %v4382_v15, %v3585_v14  ;;  %v3273_v14 = vld [vmem:[%s6644_s1 + $0x340] sm:$0xf]  ;;  %v4304_v15 = vld [vmem:[%s6644_s1 + $0x354] sm:$0xf0] }
  0xb7   :  { %2124 = vmatpush.bf16.msrb.mxu3 %v3894_v20  ;;  %v4232_v20 = vld [vmem:[%s6644_s1 + $0x114] sm:$0xf0]  ;;  %v3274_v25 = vor.u32 %v4304_v15, %v3273_v14 }
  0xb8   :  { %2083 = vmatpush.bf16.msrb.mxu0 %v3294_v28  ;;  %v3561_v28 = vld [vmem:[%s6644_s1 + $0x580] sm:$0xf] }
  0xb9   :  { %2097 = vmatpush.bf16.msrb.mxu1 %v3486_v29  ;;  %v4376_v29 = vld [vmem:[%s6644_s1 + $0x594] sm:$0xf0] }
  0xba   :  { %2111 = vmatpush.bf16.msrb.mxu2 %v3678_v30  ;;  %v2986_v30 = vor.u32 %v4232_v20, %v2985_v19  ;;  %v3562_v37 = vor.u32 %v4376_v29, %v3561_v28  ;;  %v2865_v19 = vld [vmem:[%s6644_s1 + $0x10] sm:$0xf]  ;;  %v4202_v20 = vld [vmem:[%s6644_s1 + $0x24] sm:$0xf0]  ;;  %v6005_v29 = vpop.f32.mrf.mxu1 }
  0xbb   :  { %2125 = vmatpush.bf16.msrb.mxu3 %v3870_v34  ;;  %v4226_v34 = vld [vmem:[%s6644_s1 + $0xe4] sm:$0xf0]  ;;  %v3249_v28 = vld [vmem:[%s6644_s1 + $0x310] sm:$0xf] }
  0xbc   :  { %2084 = vmatpush.bf16.msrb.mxu0 %v3270_v42  ;;  %v3537_v42 = vld [vmem:[%s6644_s1 + $0x550] sm:$0xf]  ;;  %v2962_v44 = vor.u32 %v4226_v34, %v2961_v33  ;;  %v4346_v33 = vld [vmem:[%s6644_s1 + $0x4a4] sm:$0xf0]  ;;  %v3801_v34 = vld [vmem:[%s6644_s1 + $0x760] sm:$0xf] }
  0xbd   :  { %2098 = vmatpush.bf16.msrb.mxu1 %v3462_v45  ;;  %v3154_v45 = vor.u32 %v4274_v38, %v3153_v36  ;;  %v4436_v36 = vld [vmem:[%s6644_s1 + $0x774] sm:$0xf0]  ;;  %v2866_v38 = vor.u32 %v4202_v20, %v2865_v19  ;;  %v3921_v19 = vld [vmem:[%s6644_s1 + $0x850] sm:$0xf] }
  0xbe   :  { %2112 = vmatpush.bf16.msrb.mxu2 %v3654_v46  ;;  %v3346_v46 = vor.u32 %v4322_v41, %v3345_v40  ;;  %v4484_v40 = vld [vmem:[%s6644_s1 + $0x8f4] sm:$0xf0]  ;;  %v4241_v41 = vld [vmem:[%s6644_s1 + $0x164] sm:$0xf]  ;;  %v3802_v48 = vor.u32 %v4436_v36, %v3801_v34  ;;  %v3705_v34 = vld [vmem:[%s6644_s1 + $0x6a0] sm:$0xf] }
  0xbf   :  { %2126 = vmatpush.bf16.msrb.mxu3 %v3846_v50  ;;  %v3538_v50 = vor.u32 %v4370_v43, %v3537_v42  ;;  %v3035_v42 = vld [vmem:[%s6644_s1 + $0x178] sm:$0xf0]  ;;  %v3058_v43 = vor.u32 %v4250_v27, %v3057_v26  ;;  %v2963_v26 = vld [vmem:[%s6644_s1 + $0xe8] sm:$0xf0]  ;;  %v4271_v27 = vld [vmem:[%s6644_s1 + $0x254] sm:$0xf] }
  0xc0   :  { %2085 = vmatpush.bf16.msrb.mxu0 %v3246_v58  ;;  %v3130_v58 = vor.u32 %v4268_v51, %v3129_v49  ;;  %v3777_v51 = vld [vmem:[%s6644_s1 + $0x730] sm:$0xf]  ;;  %v4412_v36 = vld [vmem:[%s6644_s1 + $0x6b4] sm:$0xf0] }
  0xc1   :  { %2099 = vmatpush.bf16.msrb.mxu1 %v3438_v62  ;;  %v3105_v62 = vld [vmem:[%s6644_s1 + $0x1f0] sm:$0xf] }
  0xc2   :  { %2113 = vmatpush.bf16.msrb.mxu2 %v3630_v63  ;;  %v3514_v63 = vor.u32 %v4364_v55, %v3513_v54  ;;  %v3106_v7 = vor.u32 %v4262_v0, %v3105_v62  ;;  %v4478_v55 = vld [vmem:[%s6644_s1 + $0x8c4] sm:$0xf0]  ;;  %v3778_v62 = vor.u32 %v4430_v52, %v3777_v51  ;;  %v3681_v51 = vld [vmem:[%s6644_s1 + $0x670] sm:$0xf] }
  0xc3   :  { %2127 = vmatpush.bf16.msrb.mxu3 %v3822_v2  ;;  %2086 = vmatmul.bf16.vlgmr.msrb.gmra.mxu0 %v4914_v22  ;;  %v4310_v2 = vld [vmem:[%s6644_s1 + $0x384] sm:$0xf0]  ;;  %v3970_v0 = vor.u32 %v4478_v55, %v3969_v53  ;;  %v3873_v53 = vld [vmem:[%s6644_s1 + $0x7f0] sm:$0xf] }
  0xc4   :  { %2134 = vmatpush.bf16.msra.mxu0 %v3034_v3  ;;  %2100 = vmatmul.bf16.vlgmr.msrb.gmra.mxu1 %v4916_v23  ;;  %v3489_v3 = vld [vmem:[%s6644_s1 + $0x4f0] sm:$0xf]  ;;  %v3298_v8 = vor.u32 %v4310_v2, %v3297_v1  ;;  %v3753_v2 = vld [vmem:[%s6644_s1 + $0x700] sm:$0xf]  ;;  %v4406_v52 = vld [vmem:[%s6644_s1 + $0x684] sm:$0xf0] }
  0xc5   :  { %2148 = vmatpush.bf16.msra.mxu1 %v3226_v4  ;;  %2114 = vmatmul.bf16.vlgmr.msrb.gmra.mxu2 %v5061_v35  ;;  %v4358_v4 = vld [vmem:[%s6644_s1 + $0x504] sm:$0xf0] }
  0xc6   :  { %2162 = vmatpush.bf16.msra.mxu2 %v3418_v5  ;;  %2128 = vmatmul.bf16.vlgmr.msrb.gmra.mxu3 %v5072_v39  ;;  %v2914_v5 = vor.u32 %v4214_v61, %v2913_v60  ;;  %v3490_v12 = vor.u32 %v4358_v4, %v3489_v3  ;;  %v4283_v60 = vld [vmem:[%s6644_s1 + $0x2b4] sm:$0xf]  ;;  %v3203_v61 = vld [vmem:[%s6644_s1 + $0x2c8] sm:$0xf0]  ;;  %v4424_v3 = vld [vmem:[%s6644_s1 + $0x714] sm:$0xf0] }
  0xc7   :  { %2176 = vmatpush.bf16.msra.mxu3 %v3610_v10  ;;  %v4208_v10 = vld [vmem:[%s6644_s1 + $0x54] sm:$0xf0]  ;;  %v3945_v4 = vld [vmem:[%s6644_s1 + $0x880] sm:$0xf]  ;;  %v3754_v14 = vor.u32 %v4424_v3, %v3753_v2  ;;  %v4454_v55 = vld [vmem:[%s6644_s1 + $0x804] sm:$0xf0] }
  0xc8   :  { %2135 = vmatpush.bf16.msra.mxu0 %v3010_v16  ;;  %v3465_v16 = vld [vmem:[%s6644_s1 + $0x4c0] sm:$0xf] }
  0xc9   :  { %2149 = vmatpush.bf16.msra.mxu1 %v3202_v17  ;;  %v4352_v17 = vld [vmem:[%s6644_s1 + $0x4d4] sm:$0xf0]  ;;  %v3657_v3 = vld [vmem:[%s6644_s1 + $0x640] sm:$0xf] }
  0xca   :  { %2163 = vmatpush.bf16.msra.mxu2 %v3394_v18  ;;  %v2890_v18 = vor.u32 %v4208_v10, %v2889_v9  ;;  %v4229_v9 = vld [vmem:[%s6644_s1 + $0x104] sm:$0xf]  ;;  %v2987_v10 = vld [vmem:[%s6644_s1 + $0x118] sm:$0xf0] }
  0xcb   :  { %2177 = vmatpush.bf16.msra.mxu3 %v3586_v24  ;;  %v3082_v24 = vor.u32 %v4256_v13, %v3081_v11  ;;  %v6089_v11 = vpop.f32.mrf.mxu3  ;;  %v3179_v13 = vld [vmem:[%s6644_s1 + $0x298] sm:$0xf0] }
  0xcc   :  { %2136 = vmatpush.bf16.msra.mxu0 %v2986_v30  ;;  %v3466_v30 = vor.u32 %v4352_v17, %v3465_v16  ;;  %v2990_v16 = vor.u32 %v4229_v9, %v2987_v10  ;;  %v3729_v17 = vld [vmem:[%s6644_s1 + $0x6d0] sm:$0xf]  ;;  %v4448_v9 = vld [vmem:[%s6644_s1 + $0x7d4] sm:$0xf0]  ;;  %v4205_v10 = vld [vmem:[%s6644_s1 + $0x44] sm:$0xf] }
  0xcd   :  { %2150 = vmatpush.bf16.msra.mxu1 %v3178_v31  ;;  %v4298_v31 = vld [vmem:[%s6644_s1 + $0x324] sm:$0xf0] }
  0xce   :  { %2164 = vmatpush.bf16.msra.mxu2 %v3370_v32  ;;  %v3441_v32 = vld [vmem:[%s6644_s1 + $0x490] sm:$0xf] }
  0xcf   :  { %2178 = vmatpush.bf16.msra.mxu3 %v3562_v37  ;;  %v3993_v37 = vld [vmem:[%s6644_s1 + $0x8e0] sm:$0xf]  ;;  %v3442_v47 = vor.u32 %v4346_v33, %v3441_v32 }
  0xd0   :  { %2137 = vmatpush.bf16.msra.mxu0 %v2962_v44  ;;  %v3250_v44 = vor.u32 %v4298_v31, %v3249_v28  ;;  %v3994_v49 = vor.u32 %v4484_v40, %v3993_v37  ;;  %v3155_v28 = vld [vmem:[%s6644_s1 + $0x268] sm:$0xf0]  ;;  %v3897_v37 = vld [vmem:[%s6644_s1 + $0x820] sm:$0xf]  ;;  %v4460_v40 = vld [vmem:[%s6644_s1 + $0x834] sm:$0xf0] }
  0xd1   :  { %2151 = vmatpush.bf16.msra.mxu1 %v3154_v45  ;;  %v4289_v45 = vld [vmem:[%s6644_s1 + $0x2e4] sm:$0xf] }
  0xd2   :  { %2165 = vmatpush.bf16.msra.mxu2 %v3346_v46  ;;  %v3227_v46 = vld [vmem:[%s6644_s1 + $0x2f8] sm:$0xf0] }
  0xd3   :  { %2179 = vmatpush.bf16.msra.mxu3 %v3538_v50  ;;  %v3038_v50 = vor.u32 %v4241_v41, %v3035_v42  ;;  %v3230_v54 = vor.u32 %v4289_v45, %v3227_v46  ;;  %v4217_v41 = vld [vmem:[%s6644_s1 + $0xa4] sm:$0xf]  ;;  %v2939_v42 = vld [vmem:[%s6644_s1 + $0xb8] sm:$0xf0] }
  0xd4   :  { %2138 = vmatpush.bf16.msra.mxu0 %v2938_v56  ;;  %v4235_v56 = vld [vmem:[%s6644_s1 + $0x134] sm:$0xf]  ;;  %v3131_v45 = vld [vmem:[%s6644_s1 + $0x238] sm:$0xf0] }
  0xd5   :  { %2152 = vmatpush.bf16.msra.mxu1 %v3130_v58  ;;  %v3011_v58 = vld [vmem:[%s6644_s1 + $0x148] sm:$0xf0] }
  0xd6   :  { %2166 = vmatpush.bf16.msra.mxu2 %v3322_v59  ;;  %v6058_v59 = vpop.f32.mrf.mxu2  ;;  %v3014_v1 = vor.u32 %v4235_v56, %v3011_v58  ;;  %v4211_v56 = vld [vmem:[%s6644_s1 + $0x74] sm:$0xf]  ;;  %v2915_v58 = vld [vmem:[%s6644_s1 + $0x88] sm:$0xf0] }
  0xd7   :  { %2180 = vmatpush.bf16.msra.mxu3 %v3514_v63  ;;  %v6066_v63 = vpop.f32.mrf.mxu0  ;;  %v2918_v2 = vor.u32 %v4211_v56, %v2915_v58  ;;  %v4331_v56 = vld [vmem:[%s6644_s1 + $0x434] sm:$0xf]  ;;  %v3395_v58 = vld [vmem:[%s6644_s1 + $0x448] sm:$0xf0] }
  0xd8   :  { %2139 = vmatpush.bf16.msra.mxu0 %v2914_v5  ;;  %v6077_v5 = vpop.f32.mrf.mxu1 }
  0xd9   :  { %2153 = vmatpush.bf16.msra.mxu1 %v3106_v7  ;;  %v3206_v7 = vor.u32 %v4283_v60, %v3203_v61  ;;  %v4259_v60 = vld [vmem:[%s6644_s1 + $0x1f4] sm:$0xf]  ;;  %v3107_v61 = vld [vmem:[%s6644_s1 + $0x208] sm:$0xf0] }
  0xda   :  { %2167 = vmatpush.bf16.msra.mxu2 %v3298_v8  ;;  %v4472_v8 = vld [vmem:[%s6644_s1 + $0x894] sm:$0xf0] }
  0xdb   :  { %2181 = vmatpush.bf16.msra.mxu3 %v3490_v12  ;;  %v4277_v12 = vld [vmem:[%s6644_s1 + $0x284] sm:$0xf]  ;;  %v3946_v15 = vor.u32 %v4472_v8, %v3945_v4  ;;  %v4400_v4 = vld [vmem:[%s6644_s1 + $0x654] sm:$0xf0]  ;;  %v3110_v8 = vor.u32 %v4259_v60, %v3107_v61  ;;  %v4379_v60 = vld [vmem:[%s6644_s1 + $0x5b4] sm:$0xf] }
  0xdc   :  { %2140 = vmatpush.bf16.msra.mxu0 %v2890_v18  ;;  %v4418_v18 = vld [vmem:[%s6644_s1 + $0x6e4] sm:$0xf0]  ;;  %v3182_v20 = vor.u32 %v4277_v12, %v3179_v13  ;;  %v2891_v12 = vld [vmem:[%s6644_s1 + $0x58] sm:$0xf0]  ;;  %v4253_v13 = vld [vmem:[%s6644_s1 + $0x1c4] sm:$0xf] }
  0xdd   :  { %2154 = vmatpush.bf16.msra.mxu1 %v3082_v24  ;;  %v4466_v24 = vld [vmem:[%s6644_s1 + $0x864] sm:$0xf0] }
  0xde   :  { %2168 = vmatpush.bf16.msra.mxu2 %v3274_v25  ;;  %v4223_v25 = vld [vmem:[%s6644_s1 + $0xd4] sm:$0xf]  ;;  %v6124_v31 = vpop.f32.mrf.mxu2  ;;  %v3922_v32 = vor.u32 %v4466_v24, %v3921_v19  ;;  %v2894_v24 = vor.u32 %v4205_v10, %v2891_v12 }
  0xdf   :  { %2182 = vmatpush.bf16.msra.mxu3 %v3466_v30  ;;  %v3730_v30 = vor.u32 %v4418_v18, %v3729_v17  ;;  %v2966_v33 = vor.u32 %v4223_v25, %v2963_v26  ;;  %v4394_v17 = vld [vmem:[%s6644_s1 + $0x624] sm:$0xf0]  ;;  %v3825_v25 = vld [vmem:[%s6644_s1 + $0x790] sm:$0xf] }
  0xe0   :  { %2141 = vmatpush.bf16.msra.mxu0 %v2866_v38  ;;  %v3158_v38 = vor.u32 %v4271_v27, %v3155_v28  ;;  %v6152_v46 = vpop.f32.mrf.mxu1  ;;  %v4442_v26 = vld [vmem:[%s6644_s1 + $0x7a4] sm:$0xf0]  ;;  %v4199_v27 = vld [vmem:[%s6644_s1 + $0x14] sm:$0xf] }
  0xe1   :  { %2155 = vmatpush.bf16.msra.mxu1 %v3058_v43  ;;  %v6144_v43 = vpop.f32.mrf.mxu0 }
  0xe2   :  { %2169 = vmatpush.bf16.msra.mxu2 %v3250_v44  ;;  %v4265_v44 = vld [vmem:[%s6644_s1 + $0x224] sm:$0xf] }
  0xe3   :  { %2183 = vmatpush.bf16.msra.mxu3 %v3442_v47  ;;  %2142 = vmatmul.bf16.vlgmr.msra.gmra.mxu0 %v4848_v57  ;;  %v3706_v47 = vor.u32 %v4412_v36, %v3705_v34  ;;  %v3059_v34 = vld [vmem:[%s6644_s1 + $0x1a8] sm:$0xf0]  ;;  %v4337_v36 = vld [vmem:[%s6644_s1 + $0x464] sm:$0xf] }
  0xe4   :  { %2190 = vmatpush.bf16.msrb.mxu0 %v3802_v48  ;;  %2156 = vmatmul.bf16.vlgmr.msra.gmra.mxu1 %v4878_v6  ;;  %v6154_v48 = vpop.f32.mrf.mxu3 }
  0xe5   :  { %2204 = vmatpush.bf16.msrb.mxu1 %v3994_v49  ;;  %2170 = vmatmul.bf16.vlgmr.msra.gmra.mxu2 %v4914_v22  ;;  %v3898_v49 = vor.u32 %v4460_v40, %v3897_v37  ;;  %v3419_v37 = vld [vmem:[%s6644_s1 + $0x478] sm:$0xf0] }
  0xe6   :  { %2218 = vmatpush.bf16.msrb.mxu2 %v3038_v50  ;;  %2184 = vmatmul.bf16.vlgmr.msra.gmra.mxu3 %v4916_v23  ;;  %v2942_v50 = vor.u32 %v4217_v41, %v2939_v42  ;;  %v3611_v41 = vld [vmem:[%s6644_s1 + $0x5f8] sm:$0xf0]  ;;  %v4433_v42 = vld [vmem:[%s6644_s1 + $0x764] sm:$0xf] }
  0xe7   :  { %2232 = vmatpush.bf16.msrb.mxu3 %v3230_v54  ;;  %v3134_v54 = vor.u32 %v4265_v44, %v3131_v45  ;;  %v3803_v44 = vld [vmem:[%s6644_s1 + $0x778] sm:$0xf0]  ;;  %v3826_v45 = vor.u32 %v4442_v26, %v3825_v25  ;;  %v4469_v26 = vld [vmem:[%s6644_s1 + $0x884] sm:$0xf] }
  0xe8   :  { %2191 = vmatpush.bf16.msrb.mxu0 %v3778_v62  ;;  %v3682_v62 = vor.u32 %v4406_v52, %v3681_v51  ;;  %v6225_v28 = vpop.f32.mrf.mxu1  ;;  %v3422_v52 = vor.u32 %v4337_v36, %v3419_v37  ;;  %v3755_v25 = vld [vmem:[%s6644_s1 + $0x718] sm:$0xf0]  ;;  %v4367_v36 = vld [vmem:[%s6644_s1 + $0x554] sm:$0xf] }
  0xe9   :  { %2205 = vmatpush.bf16.msrb.mxu1 %v3970_v0  ;;  %v6180_v0 = vpop.f32.mrf.mxu2  ;;  %v6212_v18 = vpop.f32.mrf.mxu0 }
  0xea   :  { %2219 = vmatpush.bf16.msrb.mxu2 %v3014_v1  ;;  %v3874_v1 = vor.u32 %v4454_v55, %v3873_v53  ;;  %v3806_v55 = vor.u32 %v4433_v42, %v3803_v44  ;;  %v4463_v42 = vld [vmem:[%s6644_s1 + $0x854] sm:$0xf]  ;;  %v3923_v44 = vld [vmem:[%s6644_s1 + $0x868] sm:$0xf0] }
  0xeb   :  { %2233 = vmatpush.bf16.msrb.mxu3 %v3206_v7  ;;  %v3849_v7 = vld [vmem:[%s6644_s1 + $0x7c0] sm:$0xf] }
  0xec   :  { %2192 = vmatpush.bf16.msrb.mxu0 %v3754_v14  ;;  %v3083_v14 = vld [vmem:[%s6644_s1 + $0x1d8] sm:$0xf0]  ;;  %v6214_v19 = vpop.f32.mrf.mxu3 }
  0xed   :  { %2206 = vmatpush.bf16.msrb.mxu1 %v3946_v15  ;;  %v3658_v15 = vor.u32 %v4400_v4, %v3657_v3  ;;  %v4475_v4 = vld [vmem:[%s6644_s1 + $0x8b4] sm:$0xf] }
  0xee   :  { %2220 = vmatpush.bf16.msrb.mxu2 %v2990_v16  ;;  %v3633_v16 = vld [vmem:[%s6644_s1 + $0x610] sm:$0xf] }
  0xef   :  { %2234 = vmatpush.bf16.msrb.mxu3 %v3182_v20  ;;  %v3850_v20 = vor.u32 %v4448_v9, %v3849_v7  ;;  %v3634_v40 = vor.u32 %v4394_v17, %v3633_v16  ;;  %v3971_v7 = vld [vmem:[%s6644_s1 + $0x8c8] sm:$0xf0]  ;;  %v3398_v9 = vor.u32 %v4331_v56, %v3395_v58  ;;  %v4373_v16 = vld [vmem:[%s6644_s1 + $0x584] sm:$0xf]  ;;  %v3926_v56 = vor.u32 %v4463_v42, %v3923_v44  ;;  %v3515_v58 = vld [vmem:[%s6644_s1 + $0x538] sm:$0xf0] }
  0xf0   :  { %2193 = vmatpush.bf16.msrb.mxu0 %v3730_v30  ;;  %v3086_v30 = vor.u32 %v4253_v13, %v3083_v14  ;;  %v4325_v14 = vld [vmem:[%s6644_s1 + $0x404] sm:$0xf]  ;;  %v3974_v17 = vor.u32 %v4475_v4, %v3971_v7  ;;  %v3659_v42 = vld [vmem:[%s6644_s1 + $0x658] sm:$0xf0] }
  0xf1   :  { %2207 = vmatpush.bf16.msrb.mxu1 %v3922_v32  ;;  %v2867_v32 = vld [vmem:[%s6644_s1 + $0x28] sm:$0xf0]  ;;  %v6260_v53 = vpop.f32.mrf.mxu2  ;;  %v6280_v3 = vpop.f32.mrf.mxu0 }
  0xf2   :  { %2221 = vmatpush.bf16.msrb.mxu2 %v2966_v33  ;;  %v4247_v33 = vld [vmem:[%s6644_s1 + $0x194] sm:$0xf] }
  0xf3   :  { %2235 = vmatpush.bf16.msrb.mxu3 %v3158_v38  ;;  %v4385_v38 = vld [vmem:[%s6644_s1 + $0x5e4] sm:$0xf]  ;;  %v3062_v51 = vor.u32 %v4247_v33, %v3059_v34  ;;  %v3347_v34 = vld [vmem:[%s6644_s1 + $0x3e8] sm:$0xf0] }
  0xf4   :  { %2194 = vmatpush.bf16.msrb.mxu0 %v3706_v47  ;;  %v2870_v47 = vor.u32 %v4199_v27, %v2867_v32  ;;  %v6290_v10 = vpop.f32.mrf.mxu3  ;;  %v3947_v27 = vld [vmem:[%s6644_s1 + $0x898] sm:$0xf0] }
  0xf5   :  { %2208 = vmatpush.bf16.msrb.mxu1 %v3898_v49  ;;  %v4481_v49 = vld [vmem:[%s6644_s1 + $0x8e4] sm:$0xf]  ;;  %v3950_v37 = vor.u32 %v4469_v26, %v3947_v27 }
  0xf6   :  { %2222 = vmatpush.bf16.msrb.mxu2 %v2942_v50  ;;  %v3995_v50 = vld [vmem:[%s6644_s1 + $0x8f8] sm:$0xf0]  ;;  %v6403_v26 = vld [vmem:[%s6646_s2] sm:$0x3f] }
  0xf7   :  { %2236 = vmatpush.bf16.msrb.mxu3 %v3134_v54  ;;  %v3614_v54 = vor.u32 %v4385_v38, %v3611_v41  ;;  %v3998_v61 = vor.u32 %v4481_v49, %v3995_v50  ;;  %v4415_v38 = vld [vmem:[%s6644_s1 + $0x6d4] sm:$0xf] }
  0xf8   :  { %2195 = vmatpush.bf16.msrb.mxu0 %v3682_v62  ;;  %v3587_v62 = vld [vmem:[%s6644_s1 + $0x5c8] sm:$0xf0] }
  0xf9   :  { %2209 = vmatpush.bf16.msrb.mxu1 %v3874_v1  ;;  %v4427_v1 = vld [vmem:[%s6644_s1 + $0x734] sm:$0xf]  ;;  %v3590_v12 = vor.u32 %v4379_v60, %v3587_v62  ;;  %v6338_v41 = vpop.f32.mrf.mxu2  ;;  %v4409_v60 = vld [vmem:[%s6644_s1 + $0x6a4] sm:$0xf] }
  0xfa   :  { %2223 = vmatpush.bf16.msrb.mxu2 %v2918_v2  ;;  %v3779_v2 = vld [vmem:[%s6644_s1 + $0x748] sm:$0xf0] }
  0xfb   :  { %2237 = vmatpush.bf16.msrb.mxu3 %v3110_v8  ;;  %v6288_v8 = vpop.f32.mrf.mxu1  ;;  %v3782_v13 = vor.u32 %v4427_v1, %v3779_v2  ;;  %v4457_v1 = vld [vmem:[%s6644_s1 + $0x824] sm:$0xf]  ;;  %v3899_v2 = vld [vmem:[%s6644_s1 + $0x838] sm:$0xf0] }
  0xfc   :  { %2196 = vmatpush.bf16.msrb.mxu0 %v3658_v15  ;;  %v3371_v15 = vld [vmem:[%s6644_s1 + $0x418] sm:$0xf0]  ;;  %v6368_v62 = vpop.f32.mrf.mxu3 }
  0xfd   :  { %2210 = vmatpush.bf16.msrb.mxu1 %v3850_v20  ;;  %v3563_v20 = vld [vmem:[%s6644_s1 + $0x598] sm:$0xf0] }
  0xfe   :  { %2224 = vmatpush.bf16.msrb.mxu2 %v2894_v24  ;;  %v4421_v24 = vld [vmem:[%s6644_s1 + $0x704] sm:$0xf]  ;;  %v3566_v32 = vor.u32 %v4373_v16, %v3563_v20  ;;  %v3491_v16 = vld [vmem:[%s6644_s1 + $0x508] sm:$0xf0] }
  0xff   :  { %2238 = vmatpush.bf16.msrb.mxu3 %v3086_v30  ;;  %v3374_v30 = vor.u32 %v4325_v14, %v3371_v15  ;;  %v3758_v33 = vor.u32 %v4421_v24, %v3755_v25  ;;  %v4355_v14 = vld [vmem:[%s6644_s1 + $0x4f4] sm:$0xf]  ;;  %v3902_v15 = vor.u32 %v4457_v1, %v3899_v2  ;;  %v3683_v20 = vld [vmem:[%s6644_s1 + $0x688] sm:$0xf0] }
 0x100   :  { %2197 = vmatpush.bf16.msrb.mxu0 %v3634_v40  ;;  %v3731_v40 = vld [vmem:[%s6644_s1 + $0x6e8] sm:$0xf0]  ;;  %v4451_v24 = vld [vmem:[%s6644_s1 + $0x7f4] sm:$0xf] }
 0x101   :  { %2211 = vmatpush.bf16.msrb.mxu1 %v3826_v45  ;;  %v3734_v50 = vor.u32 %v4415_v38, %v3731_v40  ;;  %v3875_v25 = vld [vmem:[%s6644_s1 + $0x808] sm:$0xf0]  ;;  %v3467_v38 = vld [vmem:[%s6644_s1 + $0x4d8] sm:$0xf0]  ;;  %v4397_v40 = vld [vmem:[%s6644_s1 + $0x644] sm:$0xf] }
 0x102   :  { %2225 = vmatpush.bf16.msrb.mxu2 %v2870_v47  ;;  %v6346_v47 = vpop.f32.mrf.mxu0  ;;  %v4343_v1 = vld [vmem:[%s6644_s1 + $0x494] sm:$0xf] }
 0x103   :  { %2239 = vmatpush.bf16.msrb.mxu3 %v3062_v51  ;;  %2198 = vmatmul.bf16.vlgmr.msrb.gmra.mxu0 %v5061_v35  ;;  %v4313_v51 = vld [vmem:[%s6644_s1 + $0x3a4] sm:$0xf] }
 0x104   :  { %2246 = vmatpush.bf16.msra.mxu0 %v3422_v52  ;;  %2212 = vmatmul.bf16.vlgmr.msrb.gmra.mxu1 %v5072_v39  ;;  %v3323_v52 = vld [vmem:[%s6644_s1 + $0x3b8] sm:$0xf0] }
 0x105   :  { %2260 = vmatpush.bf16.msra.mxu1 %v3614_v54  ;;  %2226 = vmatmul.bf16.vlgmr.msrb.gmra.mxu2 %v4848_v57  ;;  %v4319_v57 = vld [vmem:[%s6644_s1 + $0x3d4] sm:$0xf]  ;;  %v4361_v54 = vld [vmem:[%s6644_s1 + $0x524] sm:$0xf]  ;;  %v3326_v4 = vor.u32 %v4313_v51, %v3323_v52  ;;  %v318_v51 = vperm.slane %v6403_v26, 2 }
 0x106   :  { %2274 = vmatpush.bf16.msra.mxu2 %v3806_v55  ;;  %2240 = vmatmul.bf16.vlgmr.msrb.gmra.mxu3 %v4878_v6  ;;  %v3539_v6 = vld [vmem:[%s6644_s1 + $0x568] sm:$0xf0]  ;;  %v3350_v45 = vor.u32 %v4319_v57, %v3347_v34  ;;  %v6357_v55 = vpop.f32.mrf.mxu1  ;;  %v3518_v7 = vor.u32 %v4361_v54, %v3515_v58  ;;  %v4301_v34 = vld [vmem:[%s6644_s1 + $0x344] sm:$0xf]  ;;  %v6433_v54 = vpop.f32.mrf.mxu3  ;;  %v3662_v58 = vor.u32 %v4397_v40, %v3659_v42  ;;  %v4491_v42 = vld [vmem:[%s6647_s3 + $0x30] sm:$0xff] }
 0x107   :  { %2288 = vmatpush.bf16.msra.mxu3 %v3998_v61  ;;  %v3542_v49 = vor.u32 %v4367_v36, %v3539_v6  ;;  %v3707_v61 = vld [vmem:[%s6644_s1 + $0x6b8] sm:$0xf0]  ;;  %v3878_v6 = vor.u32 %v4451_v24, %v3875_v25 }
 0x108   :  { %2247 = vmatpush.bf16.msra.mxu0 %v3398_v9  ;;  %v3710_v9 = vor.u32 %v4409_v60, %v3707_v61  ;;  %v3275_v36 = vld [vmem:[%s6644_s1 + $0x358] sm:$0xf0]  ;;  %v4295_v60 = vld [vmem:[%s6644_s1 + $0x314] sm:$0xf]  ;;  %v3251_v61 = vld [vmem:[%s6644_s1 + $0x328] sm:$0xf0] }
 0x109   :  { %2261 = vmatpush.bf16.msra.mxu1 %v3590_v12  ;;  %v4307_v12 = vld [vmem:[%s6644_s1 + $0x374] sm:$0xf]  ;;  %v3278_v52 = vor.u32 %v4301_v34, %v3275_v36 }
 0x10a   :  { %2275 = vmatpush.bf16.msra.mxu2 %v3782_v13  ;;  %v3299_v13 = vld [vmem:[%s6644_s1 + $0x388] sm:$0xf0]  ;;  %v1975_v57 = vpop.f32.mrf.mxu0 }
 0x10b   :  { %2289 = vmatpush.bf16.msra.mxu3 %v3974_v17  ;;  %v4403_v17 = vld [vmem:[%s6644_s1 + $0x674] sm:$0xf]  ;;  %v3302_v27 = vor.u32 %v4307_v12, %v3299_v13  ;;  %v317_v13 = vperm.slane %v6403_v26, 1 }
 0x10c   :  { %2248 = vmatpush.bf16.msra.mxu0 %v3374_v30  ;;  %v6405_v30 = vpop.f32.mrf.mxu2 }
 0x10d   :  { %2262 = vmatpush.bf16.msra.mxu1 %v3566_v32  ;;  %v3494_v32 = vor.u32 %v4355_v14, %v3491_v16  ;;  %v4439_v14 = vld [vmem:[%s6644_s1 + $0x794] sm:$0xf]  ;;  %v1894_v34 = vadd.f32 %v6260_v53, %v317_v13 }
 0x10e   :  { %2276 = vmatpush.bf16.msra.mxu2 %v3758_v33  ;;  %v3686_v33 = vor.u32 %v4403_v17, %v3683_v20  ;;  %v1989_v44 = vpop.f32.mrf.mxu1  ;;  %v3254_v17 = vor.u32 %v4295_v60, %v3251_v61  ;;  %v4489_v60 = vld [vmem:[%s6647_s3 + $0x20] sm:$0xff] }
 0x10f   :  { %2290 = vmatpush.bf16.msra.mxu3 %v3950_v37  ;;  %v4349_v37 = vld [vmem:[%s6644_s1 + $0x4c4] sm:$0xf] }
 0x110   :  { %2249 = vmatpush.bf16.msra.mxu0 %v3350_v45  ;;  %v316_v45 = vperm.slane %v6403_v26, 0 }
 0x111   :  { %2263 = vmatpush.bf16.msra.mxu1 %v3542_v49  ;;  %v4445_v49 = vld [vmem:[%s6644_s1 + $0x7c4] sm:$0xf] }
 0x112   :  { %2277 = vmatpush.bf16.msra.mxu2 %v3734_v50  ;;  %v3851_v50 = vld [vmem:[%s6644_s1 + $0x7d8] sm:$0xf0]  ;;  %v1808_v12 = vadd.f32 %v5994_v21, %v316_v45  ;;  %v1810_v16 = vadd.f32 %v6066_v63, %v316_v45  ;;  %v1976_v21 = vadd.f32 %v1975_v57, %v318_v51  ;;  %v1977_v36 = vpop.f32.mrf.mxu0  ;;  %v1892_v57 = vadd.f32 %v6180_v0, %v317_v13  ;;  %v4499_v0 = vld [vmem:[%s6647_s3 + $0x70] sm:$0xff] }
 0x113   :  { %2291 = vmatpush.bf16.msra.mxu3 %v3926_v56  ;;  %v3470_v56 = vor.u32 %v4349_v37, %v3467_v38  ;;  %v3854_v2 = vor.u32 %v4445_v49, %v3851_v50  ;;  %v4500_v63 = vld [vmem:[%s6647_s3 + $0x78] sm:$0xff]  ;;  %v1978_v53 = vadd.f32 %v1977_v36, %v318_v51  ;;  %v1908_v45 = vadd.f32 %v6290_v10, %v1894_v34  ;;  %v4503_v34 = vld [vmem:[%s6647_s3 + $0x90] sm:$0xff]  ;;  %v4494_v36 = vld [vmem:[%s6647_s3 + $0x48] sm:$0xff] }
 0x114   :  { %2250 = vmatpush.bf16.msra.mxu0 %v3326_v4  ;;  %v3443_v4 = vld [vmem:[%s6644_s1 + $0x4a8] sm:$0xf0]  ;;  %v2003_v25 = vpop.f32.mrf.mxu2  ;;  %v1824_v37 = vadd.f32 %v6077_v5, %v1810_v16  ;;  %v4508_v38 = vld [vmem:[%s6647_s3 + $0xb8] sm:$0xff]  ;;  %v1990_v40 = vadd.f32 %v1989_v44, %v1976_v21  ;;  %v4487_v21 = vld [vmem:[%s6647_s3 + $0x10] sm:$0xff] }
 0x115   :  { %2264 = vmatpush.bf16.msra.mxu1 %v3518_v7  ;;  %v4391_v7 = vld [vmem:[%s6644_s1 + $0x614] sm:$0xf]  ;;  %v3446_v20 = vor.u32 %v4343_v1, %v3443_v4  ;;  %v4516_v49 = vld [vmem:[%s6647_s3 + $0xf8] sm:$0xff]  ;;  %v1922_v50 = vadd.f32 %v6346_v47, %v1908_v45  ;;  %v4514_v1 = vld [vmem:[%s6647_s3 + $0xe8] sm:$0xff] }
 0x116   :  { %2278 = vmatpush.bf16.msra.mxu2 %v3710_v9  ;;  %v3635_v9 = vld [vmem:[%s6644_s1 + $0x628] sm:$0xf0]  ;;  %v1838_v44 = vadd.f32 %v6124_v31, %v1824_v37  ;;  %v2004_v31 = vadd.f32 %v2003_v25, %v1990_v40  ;;  %v4497_v4 = vld [vmem:[%s6647_s3 + $0x60] sm:$0xff] }
 0x117   :  { %2292 = vmatpush.bf16.msra.mxu3 %v3902_v15  ;;  %v3827_v15 = vld [vmem:[%s6644_s1 + $0x7a8] sm:$0xf0]  ;;  %v3638_v24 = vor.u32 %v4391_v7, %v3635_v9 }
 0x118   :  { %2251 = vmatpush.bf16.msra.mxu0 %v3302_v27  ;;  %v3830_v27 = vor.u32 %v4439_v14, %v3827_v15  ;;  %v1852_v51 = vadd.f32 %v6154_v48, %v1838_v44  ;;  %v4505_v14 = vld [vmem:[%s6647_s3 + $0xa0] sm:$0xff]  ;;  %v4502_v37 = vld [vmem:[%s6647_s3 + $0x88] sm:$0xff] }
 0x119   :  { %2265 = vmatpush.bf16.msra.mxu1 %v3494_v32  ;;  %v4492_v32 = vld [vmem:[%s6647_s3 + $0x38] sm:$0xff]  ;;  %v4510_v45 = vld [vmem:[%s6647_s3 + $0xc8] sm:$0xff]  ;;  %v4501_v44 = vld [vmem:[%s6647_s3 + $0x80] sm:$0xff] }
 0x11a   :  { %2279 = vmatpush.bf16.msra.mxu2 %v3686_v33  ;;  %v1822_v33 = vadd.f32 %v6005_v29, %v1808_v12  ;;  %v2017_v29 = vpop.f32.mrf.mxu3  ;;  %v1866_v9 = vadd.f32 %v6212_v18, %v1852_v51  ;;  %v4496_v18 = vld [vmem:[%s6647_s3 + $0x58] sm:$0xff] }
 0x11b   :  { %2293 = vmatpush.bf16.msra.mxu3 %v3878_v6  ;;  %v1991_v6 = vpop.f32.mrf.mxu1 }
 0x11c   :  { %2252 = vmatpush.bf16.msra.mxu0 %v3278_v52  ;;  %v1836_v5 = vadd.f32 %v6058_v59, %v1822_v33  ;;  %v1906_v59 = vadd.f32 %v6214_v19, %v1892_v57  ;;  %v1992_v10 = vadd.f32 %v1991_v6, %v1978_v53  ;;  %v2005_v19 = vpop.f32.mrf.mxu2  ;;  %v4515_v52 = vld [vmem:[%s6647_s3 + $0xf0] sm:$0xff]  ;;  %v4485_v57 = vld [vmem:[%s6647_s3] sm:$0xff] }
 0x11d   :  { %2266 = vmatpush.bf16.msra.mxu1 %v3470_v56  ;;  %v4493_v53 = vld [vmem:[%s6647_s3 + $0x40] sm:$0xff] }
 0x11e   :  { %2280 = vmatpush.bf16.msra.mxu2 %v3662_v58  ;;  %v1920_v56 = vadd.f32 %v6280_v3, %v1906_v59  ;;  %v2018_v58 = vadd.f32 %v2017_v29, %v2004_v31  ;;  %v2006_v48 = vadd.f32 %v2005_v19, %v1992_v10  ;;  %v4511_v29 = vld [vmem:[%s6647_s3 + $0xd0] sm:$0xff] }
 0x11f   :  { %2294 = vmatpush.bf16.msra.mxu3 %v3854_v2  ;;  %v1936_v2 = vadd.f32 %v6357_v55, %v1922_v50  ;;  %v4488_v55 = vld [vmem:[%s6647_s3 + $0x18] sm:$0xff] }
 0x120   :  { %2253 = vmatpush.bf16.msra.mxu0 %v3254_v17  ;;  %v2031_v47 = vpop.f32.mrf.mxu0  ;;  %v1934_v12 = vadd.f32 %v6288_v8, %v1920_v56  ;;  %v1880_v8 = vadd.f32 %v6225_v28, %v1866_v9  ;;  %v4513_v28 = vld [vmem:[%s6647_s3 + $0xe0] sm:$0xff]  ;;  %v4524_v56 = vld [vmem:[%s6647_s3 + $0x138] sm:$0xff]  ;;  %v4522_v9 = vld [vmem:[%s6647_s3 + $0x128] sm:$0xff] }
 0x121   :  { %2267 = vmatpush.bf16.msra.mxu1 %v3446_v20  ;;  %v1950_v13 = vadd.f32 %v6405_v30, %v1936_v2  ;;  %v4504_v20 = vld [vmem:[%s6647_s3 + $0x98] sm:$0xff] }
 0x122   :  { %2281 = vmatpush.bf16.msra.mxu2 %v3638_v24  ;;  %v2019_v7 = vpop.f32.mrf.mxu3  ;;  %v1948_v30 = vadd.f32 %v6338_v41, %v1934_v12  ;;  %v4495_v41 = vld [vmem:[%s6647_s3 + $0x50] sm:$0xff] }
 0x123   :  { %2295 = vmatpush.bf16.msra.mxu3 %v3830_v27  ;;  %2254 = vmatmul.bf16.vlgmr.msra.gmra.mxu0 %v4914_v22  ;;  %v4507_v22 = vld [vmem:[%s6647_s3 + $0xb0] sm:$0xff]  ;;  %v2045_v61 = vpop.f32.mrf.mxu1  ;;  %v2020_v15 = vadd.f32 %v2019_v7, %v2006_v48  ;;  %v1964_v17 = vadd.f32 %v6433_v54, %v1950_v13 }
 0x124   :  { %2708 = vmatpush.bf16.msrb.mxu0 %v4492_v32  ;;  %2268 = vmatmul.bf16.vlgmr.msra.gmra.mxu1 %v4916_v23  ;;  %v4490_v23 = vld [vmem:[%s6647_s3 + $0x28] sm:$0xff]  ;;  %v4512_v32 = vld [vmem:[%s6647_s3 + $0xd8] sm:$0xff]  ;;  %v1962_v33 = vadd.f32 %v6368_v62, %v1948_v30  ;;  %v4521_v30 = vld [vmem:[%s6647_s3 + $0x120] sm:$0xff] }
 0x125   :  { %2722 = vmatpush.bf16.msrb.mxu1 %v4500_v63  ;;  %2282 = vmatmul.bf16.vlgmr.msra.gmra.mxu2 %v5061_v35  ;;  %v1850_v35 = vadd.f32 %v6089_v11, %v1836_v5  ;;  %v4506_v11 = vld [vmem:[%s6647_s3 + $0xa8] sm:$0xff] }
 0x126   :  { %2296 = vmatmul.bf16.vlgmr.msra.gmra.mxu3 %v5072_v39  ;;  %2736 = vmatpush.bf16.msrb.mxu2 %v4508_v38  ;;  %v4498_v39 = vld [vmem:[%s6647_s3 + $0x68] sm:$0xff] }
 0x127   :  { %2750 = vmatpush.bf16.msrb.mxu3 %v4516_v49  ;;  %v1864_v3 = vadd.f32 %v6144_v43, %v1850_v35  ;;  %v2032_v43 = vadd.f32 %v2031_v47, %v2018_v58  ;;  %v4486_v63 = vld [vmem:[%s6647_s3 + $0x8] sm:$0xff]  ;;  %v319_v49 = vperm.slane %v6403_v26, 3 }
 0x128   :  { %2709 = vmatpush.bf16.msrb.mxu0 %v4491_v42  ;;  %v2033_v24 = vpop.f32.mrf.mxu0  ;;  %v2059_v38 = vpop.f32.mrf.mxu2 }
 0x129   :  { %2723 = vmatpush.bf16.msrb.mxu1 %v4499_v0  ;;  %v1878_v16 = vadd.f32 %v6152_v46, %v1864_v3  ;;  %v2046_v25 = vadd.f32 %v2045_v61, %v2032_v43  ;;  %v2034_v46 = vadd.f32 %v2033_v24, %v2020_v15  ;;  %v2060_v35 = vadd.f32 %v2059_v38, %v319_v49  ;;  %v4523_v3 = vld [vmem:[%s6647_s3 + $0x130] sm:$0xff] }
 0x12a   :  { %2737 = vmatpush.bf16.msrb.mxu2 %v4507_v22  ;;  %v2073_v42 = vpop.f32.mrf.mxu3 }
 0x12b   :  { %2751 = vmatpush.bf16.msrb.mxu3 %v4515_v52  ;;  %v2047_v27 = vpop.f32.mrf.mxu1  ;;  %4534 = vtanh.f32 %v1878_v16  ;;  %v2074_v19 = vadd.f32 %v2073_v42, %v2060_v35  ;;  %v4527_v35 = vld [vmem:[%s6647_s3 + $0x150] sm:$0xff] }
 0x12c   :  { %2710 = vmatpush.bf16.msrb.mxu0 %v4490_v23  ;;  %4536 = vtanh.f32 %v1880_v8  ;;  %v2048_v54 = vadd.f32 %v2047_v27, %v2034_v46  ;;  %v4509_v23 = vld [vmem:[%s6647_s3 + $0xc0] sm:$0xff]  ;;  %v4518_v46 = vld [vmem:[%s6647_s3 + $0x108] sm:$0xff] }
 0x12d   :  { %2724 = vmatpush.bf16.msrb.mxu1 %v4498_v39  ;;  %4538 = vtanh.f32 %v1964_v17  ;;  %v4520_v17 = vld [vmem:[%s6647_s3 + $0x118] sm:$0xff]  ;;  %v4517_v27 = vld [vmem:[%s6647_s3 + $0x100] sm:$0xff] }
 0x12e   :  { %2738 = vmatpush.bf16.msrb.mxu2 %v4506_v11  ;;  %4540 = vtanh.f32 %v2046_v25 }
 0x12f   :  { %2752 = vmatpush.bf16.msrb.mxu3 %v4514_v1  ;;  %4542 = vtanh.f32 %v2048_v54 }
 0x130   :  { %2711 = vmatpush.bf16.msrb.mxu0 %v4489_v60  ;;  %4544 = vtanh.f32 %v1962_v33  ;;  %v2061_v50 = vpop.f32.mrf.mxu2 }
 0x131   :  { %2725 = vmatpush.bf16.msrb.mxu1 %v4497_v4  ;;  %v4535_v62 = vpop.eup %4534  ;;  %v2062_v11 = vadd.f32 %v2061_v50, %v319_v49 }
 0x132   :  { %2739 = vmatpush.bf16.msrb.mxu2 %v4505_v14  ;;  %v4537_v6 = vpop.eup %4536  ;;  %v2075_v39 = vpop.f32.mrf.mxu3 }
 0x133   :  { %2753 = vmatpush.bf16.msrb.mxu3 %v4513_v28  ;;  %v4539_v40 = vpop.eup %4538  ;;  %v2314_v22 = vpack.c.bf16 %v4537_v6, %v4535_v62  ;;  %v2076_v58 = vadd.f32 %v2075_v39, %v2062_v11  ;;  %v4526_v39 = vld [vmem:[%s6647_s3 + $0x148] sm:$0xff]  ;;  %v4525_v11 = vld [vmem:[%s6647_s3 + $0x140] sm:$0xff] }
 0x134   :  { %2712 = vmatpush.bf16.msrb.mxu0 %v4488_v55  ;;  %v4541_v5 = vpop.eup %4540 }
 0x135   :  { %2726 = vmatpush.bf16.msrb.mxu1 %v4496_v18  ;;  %v4543_v0 = vpop.eup %4542 }
 0x136   :  { %2740 = vmatpush.bf16.msrb.mxu2 %v4504_v20  ;;  %v4545_v59 = vpop.eup %4544  ;;  %v2316_v31 = vpack.c.bf16 %v4543_v0, %v4541_v5  ;;  %v4519_v20 = vld [vmem:[%s6647_s3 + $0x110] sm:$0xff] }
 0x137   :  { %2754 = vmatpush.bf16.msrb.mxu3 %v4512_v32  ;;  %v2315_v10 = vpack.c.bf16 %v4539_v40, %v4545_v59  ;;  %v4532_v32 = vld [vmem:[%s6647_s3 + $0x178] sm:$0xff]  ;;  %v4530_v40 = vld [vmem:[%s6647_s3 + $0x168] sm:$0xff] }
 0x138   :  { %2713 = vmatpush.bf16.msrb.mxu0 %v4487_v21  ;;  %v320_v21 = vperm.slane %v6403_v26, 4 }
 0x139   :  { %2727 = vmatpush.bf16.msrb.mxu1 %v4495_v41 }
 0x13a   :  { %2741 = vmatpush.bf16.msrb.mxu2 %v4503_v34 }
 0x13b   :  { %2755 = vmatpush.bf16.msrb.mxu3 %v4511_v29 }
 0x13c   :  { %2714 = vmatpush.bf16.msrb.mxu0 %v4486_v63 }
 0x13d   :  { %2728 = vmatpush.bf16.msrb.mxu1 %v4494_v36 }
 0x13e   :  { %2742 = vmatpush.bf16.msrb.mxu2 %v4502_v37 }
 0x13f   :  { %2756 = vmatpush.bf16.msrb.mxu3 %v4510_v45 }
 0x140   :  { %2715 = vmatpush.bf16.msrb.mxu0 %v4485_v57  ;;  %v2087_v51 = vpop.f32.mrf.mxu0  ;;  %v4531_v57 = vld [vmem:[%s6647_s3 + $0x170] sm:$0xff] }
 0x141   :  { %2729 = vmatpush.bf16.msrb.mxu1 %v4493_v53  ;;  %v2101_v52 = vpop.f32.mrf.mxu1  ;;  %v2088_v47 = vadd.f32 %v2087_v51, %v2074_v19 }
 0x142   :  { %2743 = vmatpush.bf16.msrb.mxu2 %v4501_v44  ;;  %v4529_v44 = vld [vmem:[%s6647_s3 + $0x160] sm:$0xff] }
 0x143   :  { %2716 = vmatmul.bf16.vlgmr.msrb.gmra.mxu0 %v2314_v22  ;;  %2757 = vmatpush.bf16.msrb.mxu3 %v4509_v23  ;;  %v2102_v60 = vadd.f32 %v2101_v52, %v2088_v47  ;;  %v321_v47 = vperm.slane %v6403_v26, 5 }
 0x144   :  { %2730 = vmatmul.bf16.vlgmr.msrb.gmra.mxu1 %v2315_v10  ;;  %2764 = vmatpush.bf16.msra.mxu0 %v4524_v56 }
 0x145   :  { %2744 = vmatmul.bf16.vlgmr.msrb.gmra.mxu2 %v2316_v31  ;;  %2778 = vmatpush.bf16.msra.mxu1 %v4532_v32  ;;  %v4528_v31 = vld [vmem:[%s6647_s3 + $0x158] sm:$0xff] }
 0x148   :  { %v2115_v61 = vpop.f32.mrf.mxu2  ;;  %v2089_v48 = vpop.f32.mrf.mxu0  ;;  %2765 = vmatpush.bf16.msra.mxu0 %v4523_v3 }
 0x149   :  { %v2129_v1 = vpop.f32.mrf.mxu3  ;;  %v2090_v2 = vadd.f32 %v2089_v48, %v2076_v58  ;;  %v2116_v4 = vadd.f32 %v2115_v61, %v2102_v60  ;;  %v2103_v7 = vpop.f32.mrf.mxu1  ;;  %2779 = vmatpush.bf16.msra.mxu1 %v4531_v57 }
 0x14b   :  { %v2104_v12 = vadd.f32 %v2103_v7, %v2090_v2  ;;  %v2130_v13 = vadd.f32 %v2129_v1, %v2116_v4 }
 0x14c   :  { %2766 = vmatpush.bf16.msra.mxu0 %v4522_v9 }
 0x14d   :  { %4546 = vtanh.f32 %v2130_v13  ;;  %2780 = vmatpush.bf16.msra.mxu1 %v4530_v40 }
 0x150   :  { %v2117_v14 = vpop.f32.mrf.mxu2  ;;  %2767 = vmatpush.bf16.msra.mxu0 %v4521_v30 }
 0x151   :  { %v2118_v43 = vadd.f32 %v2117_v14, %v2104_v12  ;;  %v2131_v55 = vpop.f32.mrf.mxu3  ;;  %2781 = vmatpush.bf16.msra.mxu1 %v4529_v44 }
 0x153   :  { %v2132_v15 = vadd.f32 %v2131_v55, %v2118_v43  ;;  %v4547_v16 = vpop.eup %4546 }
 0x154   :  { %2768 = vmatpush.bf16.msra.mxu0 %v4520_v17 }
 0x155   :  { %4548 = vtanh.f32 %v2132_v15  ;;  %2782 = vmatpush.bf16.msra.mxu1 %v4528_v31 }
 0x158   :  { %2769 = vmatpush.bf16.msra.mxu0 %v4519_v20 }
 0x159   :  { %2783 = vmatpush.bf16.msra.mxu1 %v4527_v35 }
 0x15b   :  { %v4549_v18 = vpop.eup %4548 }
 0x15c   :  { %v2317_v8 = vpack.c.bf16 %v4549_v18, %v4547_v16  ;;  %2770 = vmatpush.bf16.msra.mxu0 %v4518_v46 }
 0x15d   :  { %2784 = vmatpush.bf16.msra.mxu1 %v4526_v39 }
 0x15e   :  { %2758 = vmatmul.bf16.vlgmr.msrb.gmra.mxu3 %v2317_v8 }
 0x160   :  { %v2143_v24 = vpop.f32.mrf.mxu0  ;;  %2771 = vmatpush.bf16.msra.mxu0 %v4517_v27  ;;  %v4533_v27 = vld [vmem:[%s6648_s4] ss:$0 sm:$0xff] }
 0x161   :  { %v2157_v25 = vpop.f32.mrf.mxu1  ;;  %v2144_v28 = vadd.f32 %v2143_v24, %v320_v21  ;;  %2785 = vmatpush.bf16.msra.mxu1 %v4525_v11 }
 0x163   :  { %v2158_v33 = vadd.f32 %v2157_v25, %v2144_v28 }
 0x168   :  { %v2171_v41 = vpop.f32.mrf.mxu2  ;;  %v2145_v54 = vpop.f32.mrf.mxu0 }
 0x169   :  { %v2159_v34 = vpop.f32.mrf.mxu1  ;;  %v2185_v63 = vpop.f32.mrf.mxu3  ;;  %v2146_v36 = vadd.f32 %v2145_v54, %v320_v21  ;;  %v2172_v62 = vadd.f32 %v2171_v41, %v2158_v33 }
 0x16b   :  { %v2160_v37 = vadd.f32 %v2159_v34, %v2146_v36  ;;  %v2186_v38 = vadd.f32 %v2185_v63, %v2172_v62  ;;  %v2792_v34 = vlaneseq }
 0x170   :  { %v2173_v6 = vpop.f32.mrf.mxu2 }
 0x171   :  { %v2174_v42 = vadd.f32 %v2173_v6, %v2160_v37  ;;  %v2187_v5 = vpop.f32.mrf.mxu3  ;;  %v2793_v37 = vand.u32 127, %v2792_v34 }
 0x173   :  { %v2188_v0 = vadd.f32 %v2187_v5, %v2174_v42  ;;  %vm2794_vm0 = vcmp.lt.s32.totalorder %v2793_v37, 2 }
 0x180   :  { %v2199_v29 = vpop.f32.mrf.mxu0 }
 0x181   :  { %v2213_v53 = vpop.f32.mrf.mxu1  ;;  %v2200_v45 = vadd.f32 %v2199_v29, %v2186_v38 }
 0x183   :  { %v2214_v49 = vadd.f32 %v2213_v53, %v2200_v45 }
 0x185   :  { %4550 = vtanh.f32 %v2214_v49 }
 0x188   :  { %v2201_v59 = vpop.f32.mrf.mxu0  ;;  %v2227_v19 = vpop.f32.mrf.mxu2 }
 0x189   :  { %v2202_v22 = vadd.f32 %v2201_v59, %v2188_v0  ;;  %v2215_v10 = vpop.f32.mrf.mxu1  ;;  %v2241_v52 = vpop.f32.mrf.mxu3  ;;  %v2228_v58 = vadd.f32 %v2227_v19, %v321_v47 }
 0x18b   :  { %v2216_v23 = vadd.f32 %v2215_v10, %v2202_v22  ;;  %v4551_v50 = vpop.eup %4550  ;;  %v2242_v1 = vadd.f32 %v2241_v52, %v2228_v58 }
 0x18d   :  { %4552 = vtanh.f32 %v2216_v23 }
 0x190   :  { %v2229_v60 = vpop.f32.mrf.mxu2 }
 0x191   :  { %v2243_v61 = vpop.f32.mrf.mxu3  ;;  %v2230_v2 = vadd.f32 %v2229_v60, %v321_v47 }
 0x193   :  { %v4553_v51 = vpop.eup %4552  ;;  %v2244_v9 = vadd.f32 %v2243_v61, %v2230_v2 }
 0x194   :  { %v2318_v56 = vpack.c.bf16 %v4553_v51, %v4551_v50 }
 0x196   :  { %2772 = vmatmul.bf16.vlgmr.msra.gmra.mxu0 %v2318_v56 }
 0x1a0   :  { %v2255_v48 = vpop.f32.mrf.mxu0 }
 0x1a1   :  { %v2269_v3 = vpop.f32.mrf.mxu1  ;;  %v2256_v4 = vadd.f32 %v2255_v48, %v2242_v1 }
 0x1a3   :  { %v2270_v14 = vadd.f32 %v2269_v3, %v2256_v4 }
 0x1a8   :  { %v2283_v7 = vpop.f32.mrf.mxu2  ;;  %v2257_v13 = vpop.f32.mrf.mxu0 }
 0x1a9   :  { %v2297_v12 = vpop.f32.mrf.mxu3  ;;  %v2258_v43 = vadd.f32 %v2257_v13, %v2244_v9  ;;  %v2284_v55 = vadd.f32 %v2283_v7, %v2270_v14  ;;  %v2271_v15 = vpop.f32.mrf.mxu1 }
 0x1ab   :  { %v2272_v16 = vadd.f32 %v2271_v15, %v2258_v43  ;;  %v2298_v18 = vadd.f32 %v2297_v12, %v2284_v55 }
 0x1ad   :  { %4554 = vtanh.f32 %v2298_v18 }
 0x1b0   :  { %v2285_v26 = vpop.f32.mrf.mxu2 }
 0x1b1   :  { %v2286_v8 = vadd.f32 %v2285_v26, %v2272_v16  ;;  %v2299_v30 = vpop.f32.mrf.mxu3 }
 0x1b3   :  { %v2300_v17 = vadd.f32 %v2299_v30, %v2286_v8  ;;  %v4555_v20 = vpop.eup %4554 }
 0x1b5   :  { %4556 = vtanh.f32 %v2300_v17 }
 0x1bb   :  { %v4557_v24 = vpop.eup %4556 }
 0x1bc   :  { %v2319_v25 = vpack.c.bf16 %v4557_v24, %v4555_v20 }
 0x1be   :  { %2786 = vmatmul.bf16.vlgmr.msra.gmra.mxu1 %v2319_v25 }
 0x1c0   :  { %v2717_v46 = vpop.f32.mrf.mxu0 }
 0x1c1   :  { %v2731_v21 = vpop.f32.mrf.mxu1  ;;  %v2718_v41 = vadd.f32 %v4533_v27, %v2717_v46 }
 0x1c3   :  { %v2732_v63 = vadd.f32 %v2731_v21, %v2718_v41 }
 0x1c8   :  { %v2719_v28 = vpop.f32.mrf.mxu0  ;;  %v2745_v54 = vpop.f32.mrf.mxu2 }
 0x1c9   :  { %v2733_v32 = vpop.f32.mrf.mxu1  ;;  %v2746_v62 = vadd.f32 %v2745_v54, %v2732_v63  ;;  %v2720_v6 = vadd.f32 %v4533_v27, %v2719_v28 }
 0x1cb   :  { %v2734_v53 = vadd.f32 %v2733_v32, %v2720_v6 }
 0x1d0   :  { %v2747_v29 = vpop.f32.mrf.mxu2 }
 0x1d1   :  { %v2748_v45 = vadd.f32 %v2747_v29, %v2734_v53 }
 0x1e1   :  { %v2759_v33 = vpop.f32.mrf.mxu3 }
 0x1e2   :  { %v2760_v57 = vadd.f32 %v2759_v33, %v2746_v62 }
 0x1e9   :  { %v2761_v5 = vpop.f32.mrf.mxu3 }
 0x1ea   :  { %v2762_v49 = vadd.f32 %v2761_v5, %v2748_v45 }
 0x213   :  { %v2773_v36 = vpop.f32.mrf.mxu0 }
 0x214   :  { %v2774_v38 = vadd.f32 %v2773_v36, %v2760_v57 }
 0x21b   :  { %v2775_v44 = vpop.f32.mrf.mxu0 }
 0x21c   :  { %v2776_v59 = vadd.f32 %v2775_v44, %v2762_v49 }
 0x23b   :  { %v2787_v40 = vpop.f32.mrf.mxu1 }
 0x23c   :  { %v2788_v42 = vadd.f32 %v2787_v40, %v2774_v38 }
 0x23e   :  { %v2795_v0 = vsel %vm2794_vm0, %v2788_v42, -1e+30 }
 0x23f   :  { %2797 = vmax.xlane.f32.xlu0 %v2795_v0 }
 0x243   :  { %v2789_v22 = vpop.f32.mrf.mxu1 }
 0x244   :  { %v2790_v10 = vadd.f32 %v2789_v22, %v2776_v59 }
 0x246   :  { %v2796_v31 = vsel %vm2794_vm0, %v2790_v10, -1e+30 }
 0x247   :  { %2799 = vmax.xlane.f32.xlu0 %v2796_v31 }
 0x2b2   :  { %v2798_v23 = vpop.xlane.xlu0 %2797 }
 0x2b3   :  { %v2801_v35 = vsub.f32 %v2795_v0, %v2798_v23 }
 0x2b5   :  { %v2803_v50 = vmul.f32 1.442695, %v2801_v35 }
 0x2b7   :  { %4558 = vpow2.f32 %v2803_v50 }
 0x2ba   :  { %v2800_v39 = vpop.xlane.xlu0 %2799 }
 0x2bb   :  { %v2802_v19 = vsub.f32 %v2796_v31, %v2800_v39 }
 0x2bd   :  { %v4559_v51 = vpop.eup %4558  ;;  %v2805_v52 = vmul.f32 1.442695, %v2802_v19 }
 0x2be   :  { %2807 = vadd.xlane.f32.xlu1 %v4559_v51 }
 0x2bf   :  { %4560 = vpow2.f32 %v2805_v52 }
 0x2c5   :  { %v4561_v56 = vpop.eup %4560 }
 0x2c6   :  { %2809 = vadd.xlane.f32.xlu1 %v4561_v56 }
 0x331   :  { %v2808_v11 = vpop.xlane.xlu1 %2807 }
 0x332   :  { %4562 = vlog2.f32 %v2808_v11 }
 0x338   :  { %v4563_v47 = vpop.eup %4562 }
 0x339   :  { %v2812_v58 = vmul.f32 0.6931472, %v4563_v47  ;;  %v2810_v60 = vpop.xlane.xlu1 %2809 }
 0x33a   :  { %4564 = vlog2.f32 %v2810_v60 }
 0x33b   :  { %v2815_v61 = vsub.f32 %v2801_v35, %v2812_v58 }
 0x33d   :  { %2817 = vst [vmem:[%s6649_s5] sm:$0xff] %v2815_v61 }
 0x340   :  { %v4565_v48 = vpop.eup %4564 }
 0x341   :  { %v2814_v1 = vmul.f32 0.6931472, %v4565_v48 }
 0x343   :  { %v2816_v3 = vsub.f32 %v2802_v19, %v2814_v1 }
 0x345   :  { %2818 = vst [vmem:[%s6649_s5 + $0x8] sm:$0xff] %v2816_v3 }

</bundles_post_ra>
